<compile_context>
chip_gen: v5e
topology: v5e:2x2
jax: 0.10.0
libtpu: 0.0.40
codegen_flags: <defaults>
</compile_context>

<pallas_src>
import jax
import jax.numpy as jnp
from jax.experimental import pallas as pl
from jax.experimental.pallas import tpu as pltpu


def mlp_kernel(x_ref,
               w1_ref, b1_ref,
               w2_ref, b2_ref,
               w3_ref, b3_ref,
               w4_ref, b4_ref,
               w5_ref, b5_ref,
               o_ref):
    """One batch tile of the 5-layer MLP (4 MXU matmuls + VPU/XLU epilogue)."""
    # f32 tile straight from HBM; cast to bf16 on the VPU (free slack here).
    x = x_ref[...].astype(jnp.bfloat16)                      # [TB, 768]

    h = jnp.dot(x, w1_ref[...], preferred_element_type=jnp.float32) + b1_ref[...]
    h = jnp.maximum(h, 0.0).astype(jnp.bfloat16)

    h = jnp.dot(h, w2_ref[...], preferred_element_type=jnp.float32) + b2_ref[...]
    h = jnp.maximum(h, 0.0).astype(jnp.bfloat16)

    h = jnp.dot(h, w3_ref[...], preferred_element_type=jnp.float32) + b3_ref[...]
    h = jnp.maximum(h, 0.0).astype(jnp.bfloat16)

    h = jnp.dot(h, w4_ref[...], preferred_element_type=jnp.float32) + b4_ref[...]
    h = jnp.maximum(h, 0.0)                                   # f32 for epilogue

    # Final 64 -> 1 layer: VPU multiply + XLU row-reduce (avoids a lane-sparse
    # [TB,64]x[64,1] MXU matmul). Scalar bias lives in SMEM.
    w5 = w5_ref[...]                                          # [1, 64] f32
    out = jnp.sum(h * w5, axis=-1, keepdims=True) + b5_ref[0, 0]
    out = jnp.tanh(out) * 1000.0

    o_ref[...] = out.astype(o_ref.dtype)


def _round_up(v, m):
    return ((v + m - 1) // m) * m


def prepare_params(params):
    """One-time conversion of PyTorch-layout params to kernel operands.
    Call once and reuse: avoids per-forward f32->bf16 weight cast ops."""
    (w1, b1), (w2, b2), (w3, b3), (w4, b4), (w5, b5) = params
    return (
        w1.astype(jnp.bfloat16), b1.astype(jnp.float32),
        w2.astype(jnp.bfloat16), b2.astype(jnp.float32),
        w3.astype(jnp.bfloat16), b3.astype(jnp.float32),
        w4.astype(jnp.bfloat16), b4.astype(jnp.float32),
        w5.reshape(1, -1).astype(jnp.float32),   # [64,1] -> [1,64], tiny, f32
        b5.reshape(1, 1).astype(jnp.float32),    # scalar bias -> SMEM
    )


def neural_network_forward(x, prepared, *, block_rows=1024):
    """x: [B, 768] float32; prepared: output of prepare_params().
    Returns [B, 1] float32."""
    w1b, b1, w2b, b2, w3b, b3, w4b, b4, w5r, b5s = prepared
    B = x.shape[0]
    x = jnp.asarray(x, jnp.float32)

    # Batch tile: multiple of 8 sublanes. For B >= 16, cap the tile so the
    # "parallel" grid has >= 2 steps (keeps both v7x TensorCores busy);
    # larger default block_rows amortizes per-step overhead on v5e/v6e.
    if B >= 16:
        TB = min(block_rows, _round_up(pl.cdiv(B, 2), 8))
    else:
        TB = _round_up(max(B, 1), 8)
    grid = (pl.cdiv(B, TB),)   # ragged final block handled by Pallas (no pad)

    def resident(arr):
        # Whole-array block, constant index -> loaded once, VMEM-resident.
        # Single-buffered: no need for a second pipeline buffer.
        return pl.BlockSpec(arr.shape, lambda i: (0, 0),
                            pipeline_mode=pl.Buffered(1))

    out = pl.pallas_call(
        mlp_kernel,
        out_shape=jax.ShapeDtypeStruct((B, 1), jnp.float32),
        grid=grid,
        in_specs=[
            pl.BlockSpec((TB, 768), lambda i: (i, 0)),   # f32 x tile, double-buffered
            resident(w1b), resident(b1),
            resident(w2b), resident(b2),
            resident(w3b), resident(b3),
            resident(w4b), resident(b4),
            resident(w5r),
            pl.BlockSpec(memory_space=pltpu.SMEM),       # scalar bias b5
        ],
        out_specs=pl.BlockSpec((TB, 1), lambda i: (i, 0)),
        compiler_params=pltpu.CompilerParams(
            dimension_semantics=("parallel",),
            vmem_limit_bytes=40 << 20,
        ),
    )(x, w1b, b1, w2b, b2, w3b, b3, w4b, b4, w5r, b5s)

    return out


def reference_forward(x, params):
    """Pure-JAX reference with the same bf16-weight / f32-accum numerics."""
    (w1, b1), (w2, b2), (w3, b3), (w4, b4), (w5, b5) = params
    h = x.astype(jnp.bfloat16)
    for idx, (w, b) in enumerate(((w1, b1), (w2, b2), (w3, b3), (w4, b4))):
        h = jnp.dot(h, w.astype(jnp.bfloat16),
                    preferred_element_type=jnp.float32) + b
        h = jnp.maximum(h, 0.0)
        if idx < 3:
            h = h.astype(jnp.bfloat16)
    out = jnp.sum(h * w5.reshape(1, -1).astype(jnp.float32),
                  axis=-1, keepdims=True) + b5
    return jnp.tanh(out) * 1000.0


def _init_linear(key, fan_in, fan_out):
    """Deterministic PyTorch-style (Kaiming-uniform-ish) init.
    Weight returned as [in, out] so the kernel computes x @ W."""
    kw, kb = jax.random.split(key)
    bound = 1.0 / jnp.sqrt(fan_in)
    w = jax.random.uniform(kw, (fan_in, fan_out), jnp.float32, -bound, bound)
    b = jax.random.uniform(kb, (1, fan_out), jnp.float32, -bound, bound)
    return w, b


def init_params(key):
    keys = jax.random.split(key, 5)
    dims = [(768, 512), (512, 256), (256, 128), (128, 64), (64, 1)]
    return tuple(_init_linear(k, fi, fo) for k, (fi, fo) in zip(keys, dims))


if __name__ == "__main__":
    key = jax.random.PRNGKey(0)
    k_params, k_x1, k_x2 = jax.random.split(key, 3)

    params = init_params(k_params)
    prepared = prepare_params(params)   # one-time bf16 weight cast

    # Small batch (single grid step).
    B1 = 8
    x1 = jax.random.normal(k_x1, (B1, 768), dtype=jnp.float32)
    out1 = jax.block_until_ready(neural_network_forward(x1, prepared))
    assert out1.shape == (B1, 1) and out1.dtype == jnp.float32
    assert bool(jnp.all(jnp.abs(out1) <= 1000.0))
    ref1 = reference_forward(x1, params)
    assert bool(jnp.allclose(out1, ref1, atol=0.5, rtol=1e-2)), (
        float(jnp.max(jnp.abs(out1 - ref1))))

    # Ragged batch: >= 2 grid steps (megacore path) + uneven final block.
    B2 = 20
    x2 = jax.random.normal(k_x2, (B2, 768), dtype=jnp.float32)
    out2 = jax.block_until_ready(neural_network_forward(x2, prepared))
    assert out2.shape == (B2, 1) and out2.dtype == jnp.float32
    assert bool(jnp.all(jnp.abs(out2) <= 1000.0))
    ref2 = reference_forward(x2, params)
    assert bool(jnp.allclose(out2, ref2, atol=0.5, rtol=1e-2)), (
        float(jnp.max(jnp.abs(out2 - ref2))))

    print("KERNEL_OK")
</pallas_src>

<mosaic_0001>
module attributes {stable_mosaic.version = 11 : i64} {
  func.func @mlp_kernel(%arg0: i32, %arg1: memref<8x768xf32, #tpu.memory_space<vmem>>, %arg2: memref<768x512xbf16, #tpu.memory_space<vmem>>, %arg3: memref<1x512xf32, #tpu.memory_space<vmem>>, %arg4: memref<512x256xbf16, #tpu.memory_space<vmem>>, %arg5: memref<1x256xf32, #tpu.memory_space<vmem>>, %arg6: memref<256x128xbf16, #tpu.memory_space<vmem>>, %arg7: memref<1x128xf32, #tpu.memory_space<vmem>>, %arg8: memref<128x64xbf16, #tpu.memory_space<vmem>>, %arg9: memref<1x64xf32, #tpu.memory_space<vmem>>, %arg10: memref<1x64xf32, #tpu.memory_space<vmem>>, %arg11: memref<1x1xf32, #tpu.memory_space<smem>>, %arg12: memref<8x1xf32, #tpu.memory_space<vmem>>) attributes {dimension_semantics = [#tpu.dimension_semantics<parallel>], iteration_bounds = array<i64: 1>, scalar_prefetch = 0 : i64, scratch_operands = 0 : i64, tpu.core_type = #tpu.core_type<tc>, window_params = [{transform_indices = @transform_0, window_bounds = array<i64: 8, 768>}, {pipeline_mode = #tpu.pipeline_mode<synchronous>, transform_indices = @transform_1, window_bounds = array<i64: 768, 512>}, {pipeline_mode = #tpu.pipeline_mode<synchronous>, transform_indices = @transform_2, window_bounds = array<i64: 1, 512>}, {pipeline_mode = #tpu.pipeline_mode<synchronous>, transform_indices = @transform_3, window_bounds = array<i64: 512, 256>}, {pipeline_mode = #tpu.pipeline_mode<synchronous>, transform_indices = @transform_4, window_bounds = array<i64: 1, 256>}, {pipeline_mode = #tpu.pipeline_mode<synchronous>, transform_indices = @transform_5, window_bounds = array<i64: 256, 128>}, {pipeline_mode = #tpu.pipeline_mode<synchronous>, transform_indices = @transform_6, window_bounds = array<i64: 1, 128>}, {pipeline_mode = #tpu.pipeline_mode<synchronous>, transform_indices = @transform_7, window_bounds = array<i64: 128, 64>}, {pipeline_mode = #tpu.pipeline_mode<synchronous>, transform_indices = @transform_8, window_bounds = array<i64: 1, 64>}, {pipeline_mode = #tpu.pipeline_mode<synchronous>, transform_indices = @transform_9, window_bounds = array<i64: 1, 64>}, {transform_indices = @transform_10, window_bounds = array<i64: 1, 1>}, {transform_indices = @transform_11, window_bounds = array<i64: 8, 1>}]} {
    %c0 = arith.constant 0 : index
    %c0_0 = arith.constant 0 : index
    %0 = vector.load %arg1[%c0, %c0_0] : memref<8x768xf32, #tpu.memory_space<vmem>>, vector<8x768xf32>
    %1 = arith.truncf %0 : vector<8x768xf32> to vector<8x768xbf16>
    %c0_1 = arith.constant 0 : index
    %c0_2 = arith.constant 0 : index
    %2 = vector.load %arg2[%c0_1, %c0_2] : memref<768x512xbf16, #tpu.memory_space<vmem>>, vector<768x512xbf16>
    %cst = arith.constant dense<0.000000e+00> : vector<8x512xf32>
    %3 = tpu.matmul %1, %2, %cst {dimension_numbers = #tpu.dot_dimension_numbers<[1], [0], [0], [1], [0, 0, 1, 1], [], []>} : vector<8x768xbf16>, vector<768x512xbf16>, vector<8x512xf32> -> vector<8x512xf32>
    %c0_3 = arith.constant 0 : index
    %c0_4 = arith.constant 0 : index
    %4 = vector.load %arg3[%c0_3, %c0_4] : memref<1x512xf32, #tpu.memory_space<vmem>>, vector<1x512xf32>
    %5 = vector.broadcast %4 : vector<1x512xf32> to vector<8x512xf32>
    %6 = arith.addf %3, %5 : vector<8x512xf32>
    %cst_5 = arith.constant 0.000000e+00 : f32
    %7 = vector.broadcast %cst_5 : f32 to vector<8x512xf32>
    %8 = arith.maximumf %6, %7 : vector<8x512xf32>
    %9 = arith.truncf %8 : vector<8x512xf32> to vector<8x512xbf16>
    %c0_6 = arith.constant 0 : index
    %c0_7 = arith.constant 0 : index
    %10 = vector.load %arg4[%c0_6, %c0_7] : memref<512x256xbf16, #tpu.memory_space<vmem>>, vector<512x256xbf16>
    %cst_8 = arith.constant dense<0.000000e+00> : vector<8x256xf32>
    %11 = tpu.matmul %9, %10, %cst_8 {dimension_numbers = #tpu.dot_dimension_numbers<[1], [0], [0], [1], [0, 0, 1, 1], [], []>} : vector<8x512xbf16>, vector<512x256xbf16>, vector<8x256xf32> -> vector<8x256xf32>
    %c0_9 = arith.constant 0 : index
    %c0_10 = arith.constant 0 : index
    %12 = vector.load %arg5[%c0_9, %c0_10] : memref<1x256xf32, #tpu.memory_space<vmem>>, vector<1x256xf32>
    %13 = vector.broadcast %12 : vector<1x256xf32> to vector<8x256xf32>
    %14 = arith.addf %11, %13 : vector<8x256xf32>
    %cst_11 = arith.constant 0.000000e+00 : f32
    %15 = vector.broadcast %cst_11 : f32 to vector<8x256xf32>
    %16 = arith.maximumf %14, %15 : vector<8x256xf32>
    %17 = arith.truncf %16 : vector<8x256xf32> to vector<8x256xbf16>
    %c0_12 = arith.constant 0 : index
    %c0_13 = arith.constant 0 : index
    %18 = vector.load %arg6[%c0_12, %c0_13] : memref<256x128xbf16, #tpu.memory_space<vmem>>, vector<256x128xbf16>
    %cst_14 = arith.constant dense<0.000000e+00> : vector<8x128xf32>
    %19 = tpu.matmul %17, %18, %cst_14 {dimension_numbers = #tpu.dot_dimension_numbers<[1], [0], [0], [1], [0, 0, 1, 1], [], []>} : vector<8x256xbf16>, vector<256x128xbf16>, vector<8x128xf32> -> vector<8x128xf32>
    %c0_15 = arith.constant 0 : index
    %c0_16 = arith.constant 0 : index
    %20 = vector.load %arg7[%c0_15, %c0_16] : memref<1x128xf32, #tpu.memory_space<vmem>>, vector<1x128xf32>
    %21 = vector.broadcast %20 : vector<1x128xf32> to vector<8x128xf32>
    %22 = arith.addf %19, %21 : vector<8x128xf32>
    %cst_17 = arith.constant 0.000000e+00 : f32
    %23 = vector.broadcast %cst_17 : f32 to vector<8x128xf32>
    %24 = arith.maximumf %22, %23 : vector<8x128xf32>
    %25 = arith.truncf %24 : vector<8x128xf32> to vector<8x128xbf16>
    %c0_18 = arith.constant 0 : index
    %c0_19 = arith.constant 0 : index
    %26 = vector.load %arg8[%c0_18, %c0_19] : memref<128x64xbf16, #tpu.memory_space<vmem>>, vector<128x64xbf16>
    %cst_20 = arith.constant dense<0.000000e+00> : vector<8x64xf32>
    %27 = tpu.matmul %25, %26, %cst_20 {dimension_numbers = #tpu.dot_dimension_numbers<[1], [0], [0], [1], [0, 0, 1, 1], [], []>} : vector<8x128xbf16>, vector<128x64xbf16>, vector<8x64xf32> -> vector<8x64xf32>
    %c0_21 = arith.constant 0 : index
    %c0_22 = arith.constant 0 : index
    %28 = vector.load %arg9[%c0_21, %c0_22] : memref<1x64xf32, #tpu.memory_space<vmem>>, vector<1x64xf32>
    %29 = vector.broadcast %28 : vector<1x64xf32> to vector<8x64xf32>
    %30 = arith.addf %27, %29 : vector<8x64xf32>
    %cst_23 = arith.constant 0.000000e+00 : f32
    %31 = vector.broadcast %cst_23 : f32 to vector<8x64xf32>
    %32 = arith.maximumf %30, %31 : vector<8x64xf32>
    %c0_24 = arith.constant 0 : index
    %c0_25 = arith.constant 0 : index
    %33 = vector.load %arg10[%c0_24, %c0_25] : memref<1x64xf32, #tpu.memory_space<vmem>>, vector<1x64xf32>
    %34 = vector.broadcast %33 : vector<1x64xf32> to vector<8x64xf32>
    %35 = arith.mulf %32, %34 : vector<8x64xf32>
    %cst_26 = arith.constant dense<0.000000e+00> : vector<8xf32>
    %36 = vector.multi_reduction <add>, %35, %cst_26 [1] : vector<8x64xf32> to vector<8xf32>
    %37 = vector.shape_cast %36 : vector<8xf32> to vector<8x1xf32>
    %c0_27 = arith.constant 0 : index
    %c0_28 = arith.constant 0 : index
    %38 = memref.load %arg11[%c0_27, %c0_28] : memref<1x1xf32, #tpu.memory_space<smem>>
    %39 = vector.broadcast %38 : f32 to vector<8x1xf32>
    %40 = arith.addf %37, %39 : vector<8x1xf32>
    %41 = math.tanh %40 : vector<8x1xf32>
    %cst_29 = arith.constant 1.000000e+03 : f32
    %42 = vector.broadcast %cst_29 : f32 to vector<8x1xf32>
    %43 = arith.mulf %41, %42 : vector<8x1xf32>
    %c0_30 = arith.constant 0 : index
    %c0_31 = arith.constant 0 : index
    %44 = vector.load %arg12[%c0_30, %c0_31] : memref<8x1xf32, #tpu.memory_space<vmem>>, vector<8x1xf32>
    tpu.vector_store %arg12[%c0_30, %c0_31], %43 {strides = array<i32>} : memref<8x1xf32, #tpu.memory_space<vmem>>, vector<8x1xf32>,
    return
  }
  func.func @transform_0(%arg0: i32) -> (i32, i32) {
    %c0_i32 = arith.constant 0 : i32
    %c0_i32_0 = arith.constant 0 : i32
    return %arg0, %c0_i32 : i32, i32
  }
  func.func @transform_1(%arg0: i32) -> (i32, i32) {
    %c0_i32 = arith.constant 0 : i32
    %c0_i32_0 = arith.constant 0 : i32
    %c0_i32_1 = arith.constant 0 : i32
    return %c0_i32, %c0_i32_0 : i32, i32
  }
  func.func @transform_2(%arg0: i32) -> (i32, i32) {
    %c0_i32 = arith.constant 0 : i32
    %c0_i32_0 = arith.constant 0 : i32
    %c0_i32_1 = arith.constant 0 : i32
    return %c0_i32, %c0_i32_0 : i32, i32
  }
  func.func @transform_3(%arg0: i32) -> (i32, i32) {
    %c0_i32 = arith.constant 0 : i32
    %c0_i32_0 = arith.constant 0 : i32
    %c0_i32_1 = arith.constant 0 : i32
    return %c0_i32, %c0_i32_0 : i32, i32
  }
  func.func @transform_4(%arg0: i32) -> (i32, i32) {
    %c0_i32 = arith.constant 0 : i32
    %c0_i32_0 = arith.constant 0 : i32
    %c0_i32_1 = arith.constant 0 : i32
    return %c0_i32, %c0_i32_0 : i32, i32
  }
  func.func @transform_5(%arg0: i32) -> (i32, i32) {
    %c0_i32 = arith.constant 0 : i32
    %c0_i32_0 = arith.constant 0 : i32
    %c0_i32_1 = arith.constant 0 : i32
    return %c0_i32, %c0_i32_0 : i32, i32
  }
  func.func @transform_6(%arg0: i32) -> (i32, i32) {
    %c0_i32 = arith.constant 0 : i32
    %c0_i32_0 = arith.constant 0 : i32
    %c0_i32_1 = arith.constant 0 : i32
    return %c0_i32, %c0_i32_0 : i32, i32
  }
  func.func @transform_7(%arg0: i32) -> (i32, i32) {
    %c0_i32 = arith.constant 0 : i32
    %c0_i32_0 = arith.constant 0 : i32
    %c0_i32_1 = arith.constant 0 : i32
    return %c0_i32, %c0_i32_0 : i32, i32
  }
  func.func @transform_8(%arg0: i32) -> (i32, i32) {
    %c0_i32 = arith.constant 0 : i32
    %c0_i32_0 = arith.constant 0 : i32
    %c0_i32_1 = arith.constant 0 : i32
    return %c0_i32, %c0_i32_0 : i32, i32
  }
  func.func @transform_9(%arg0: i32) -> (i32, i32) {
    %c0_i32 = arith.constant 0 : i32
    %c0_i32_0 = arith.constant 0 : i32
    %c0_i32_1 = arith.constant 0 : i32
    return %c0_i32, %c0_i32_0 : i32, i32
  }
  func.func @transform_10(%arg0: i32) -> (i32, i32) {
    %c0_i32 = arith.constant 0 : i32
    %c0_i32_0 = arith.constant 0 : i32
    %c0_i32_1 = arith.constant 0 : i32
    return %c0_i32, %c0_i32_0 : i32, i32
  }
  func.func @transform_11(%arg0: i32) -> (i32, i32) {
    %c0_i32 = arith.constant 0 : i32
    %c0_i32_0 = arith.constant 0 : i32
    return %arg0, %c0_i32 : i32, i32
  }
}

</mosaic_0001>

<bundles_post_ra>
// kernel: tpu_custom_call.1
= control target key start
LH: loop header
LB: loop body
LE: loop exit
PB: predicated region body
PF: predicated region fallthrough
CT: control target
= control target key end

     0   :  { %17 = vsyncpa [#allocation4], 0  ;;  %s4034_s0 = inlined_call_operand.vmem [shape: f32[8,768], index: 0, kind: input, shape index: {}]   ;;  %s4035_s1 = inlined_call_operand.hbm [shape: bf16[768,512], index: 1, kind: input, shape index: {}]   ;;  %s4036_s2 = inlined_call_operand.vmem [shape: f32[1,512], index: 2, kind: input, shape index: {}]   ;;  %s4037_s3 = inlined_call_operand.hbm [shape: bf16[512,256], index: 3, kind: input, shape index: {}]   ;;  %s4038_s4 = inlined_call_operand.vmem [shape: f32[1,256], index: 4, kind: input, shape index: {}]   ;;  %s4039_s5 = inlined_call_operand.hbm [shape: bf16[256,128], index: 5, kind: input, shape index: {}]   ;;  %s4040_s6 = inlined_call_operand.vmem [shape: f32[1,128], index: 6, kind: input, shape index: {}]   ;;  %s4041_s7 = inlined_call_operand.vmem [shape: bf16[128,64], index: 7, kind: input, shape index: {}]   ;;  %s4042_s8 = inlined_call_operand.vmem [shape: f32[1,64], index: 8, kind: input, shape index: {}]   ;;  %s4043_s9 = inlined_call_operand.vmem [shape: f32[1,64], index: 9, kind: input, shape index: {}]   ;;  %s4044_s10 = inlined_call_operand.<no memory space> [shape: f32[1,1], index: 10, kind: input, shape index: {}]   ;;  %s4045_s11 = inlined_call_operand.vmem [shape: f32[8,1], index: 11, kind: output, shape index: {}]  }
   0x1   :  { %18 = vsyncpa [#allocation6], 0  ;;  %s40_s19 = sshll.u32 %s4037_s3, 4  ;;  %s3832_s20 = smov [#allocation5]   ;;  %s41_s19 = int_to_ptr.hbm [resolvable:$true] %s40_s19 }
   0x2   :  { %s42_s21 = sshll.u32 %s3832_s20, 4  ;;  %s25_s24 = sshll.u32 %s4035_s1, 4  ;;  %s43_s21 = int_to_ptr.vmem [resolvable:$true] %s42_s21  ;;  %s26_s24 = int_to_ptr.hbm [resolvable:$true] %s25_s24 }
   0x3   :  { %s3833_s25 = smov 128   ;;  %s3834_s26 = smov 8  }
   0x4   :  { %48 = dma.hbm_to_vmem [thread:$0]  %s41_s19, 8192, %s43_s21, [#allocation6], %s3833_s25, %s3833_s25, %s3834_s26  }
   0x5   :  { %s3835_s27 = smov [#allocation3]   ;;  %s3836_s29 = smov 256  }
   0x6   :  { %s27_s28 = sshll.u32 %s3835_s27, 4  ;;  %s3837_s30 = smov 16   ;;  %s28_s28 = int_to_ptr.vmem [resolvable:$true] %s27_s28 }
   0x7   :  { %33 = dma.hbm_to_vmem [thread:$0]  %s26_s24, 24576, %s28_s28, [#allocation4], %s3836_s29, %s3836_s29, %s3837_s30  }
   0x8   :  { %s55_s13 = sshll.u32 %s4039_s5, 4  ;;  %s3838_s14 = smov [#allocation7]   ;;  %s56_s13 = int_to_ptr.hbm [resolvable:$true] %s55_s13 }
   0x9   :  { %s57_s15 = sshll.u32 %s3838_s14, 4  ;;  %s3839_s16 = smov 64   ;;  %s58_s15 = int_to_ptr.vmem [resolvable:$true] %s57_s15 }
   0xa   :  { %s3840_s1 = smov 4  }
   0xb   :  { %63 = dma.hbm_to_vmem [thread:$0]  %s56_s13, 2048, %s58_s15, [#allocation6], %s3839_s16, %s3839_s16, %s3840_s1  }
   0xc   :  { %3828 = dma.done.wait [#allocation4], 24576  }
   0xd   :  { %3829 = vsyncadd [#allocation4], 4294942720 }
   0xe   :  { %3830 = dma.done.wait [#allocation6], 10240  }
   0xf   :  { %3831 = vsyncadd [#allocation6], 4294957056  ;;  %v2456_v0 = vld [vmem:[#allocation3 + $0xe0] sm:$0xf]  ;;  %v3492_v1 = vld [vmem:[#allocation3 + $0xec] sm:$0xf0] }
  0x10   :  { %v2584_v2 = vld [vmem:[#allocation3 + $0x1e0] sm:$0xf]  ;;  %v2457_v3 = vor.u32 %v3492_v1, %v2456_v0  ;;  %v3524_v4 = vld [vmem:[#allocation3 + $0x1ec] sm:$0xf0]  ;;  %vm2325_vm0 = vcmask 523264   ;;  %vm2334_vm1 = vcmask 7168  }
  0x11   :  { %v2712_v5 = vld [vmem:[#allocation3 + $0x2e0] sm:$0xf]  ;;  %v3556_v6 = vld [vmem:[#allocation3 + $0x2ec] sm:$0xf0]  ;;  %v2585_v7 = vor.u32 %v3524_v4, %v2584_v2 }
  0x12   :  { %v2713_v8 = vor.u32 %v3556_v6, %v2712_v5  ;;  %v2840_v9 = vld [vmem:[#allocation3 + $0x3e0] sm:$0xf]  ;;  %v3588_v10 = vld [vmem:[#allocation3 + $0x3ec] sm:$0xf0]  ;;  %1260 = vmatpush.bf16.msra.mxu0 %v2457_v3 }
  0x13   :  { %v2440_v11 = vld [vmem:[#allocation3 + $0xc0] sm:$0xf]  ;;  %v2841_v12 = vor.u32 %v3588_v10, %v2840_v9  ;;  %v3488_v13 = vld [vmem:[#allocation3 + $0xcc] sm:$0xf0]  ;;  %1273 = vmatpush.bf16.msra.mxu1 %v2585_v7 }
  0x14   :  { %v2568_v14 = vld [vmem:[#allocation3 + $0x1c0] sm:$0xf]  ;;  %v3520_v15 = vld [vmem:[#allocation3 + $0x1cc] sm:$0xf0]  ;;  %1286 = vmatpush.bf16.msra.mxu2 %v2713_v8  ;;  %v2441_v16 = vor.u32 %v3488_v13, %v2440_v11 }
  0x15   :  { %v2569_v17 = vor.u32 %v3520_v15, %v2568_v14  ;;  %v2696_v18 = vld [vmem:[#allocation3 + $0x2c0] sm:$0xf]  ;;  %v3552_v19 = vld [vmem:[#allocation3 + $0x2cc] sm:$0xf0]  ;;  %1299 = vmatpush.bf16.msra.mxu3 %v2841_v12 }
  0x16   :  { %v2824_v20 = vld [vmem:[#allocation3 + $0x3c0] sm:$0xf]  ;;  %v2697_v21 = vor.u32 %v3552_v19, %v2696_v18  ;;  %v3584_v22 = vld [vmem:[#allocation3 + $0x3cc] sm:$0xf0]  ;;  %1261 = vmatpush.bf16.msra.mxu0 %v2441_v16 }
  0x17   :  { %v2424_v23 = vld [vmem:[#allocation3 + $0xa0] sm:$0xf]  ;;  %v3484_v24 = vld [vmem:[#allocation3 + $0xac] sm:$0xf0]  ;;  %v2825_v25 = vor.u32 %v3584_v22, %v2824_v20  ;;  %1274 = vmatpush.bf16.msra.mxu1 %v2569_v17 }
  0x18   :  { %v2552_v26 = vld [vmem:[#allocation3 + $0x1a0] sm:$0xf]  ;;  %v3516_v27 = vld [vmem:[#allocation3 + $0x1ac] sm:$0xf0]  ;;  %v2425_v29 = vor.u32 %v3484_v24, %v2424_v23  ;;  %1287 = vmatpush.bf16.msra.mxu2 %v2697_v21 }
  0x19   :  { %v2680_v28 = vld [vmem:[#allocation3 + $0x2a0] sm:$0xf]  ;;  %v3548_v30 = vld [vmem:[#allocation3 + $0x2ac] sm:$0xf0]  ;;  %v2553_v33 = vor.u32 %v3516_v27, %v2552_v26  ;;  %1300 = vmatpush.bf16.msra.mxu3 %v2825_v25 }
  0x1a   :  { %v2808_v31 = vld [vmem:[#allocation3 + $0x3a0] sm:$0xf]  ;;  %v3580_v32 = vld [vmem:[#allocation3 + $0x3ac] sm:$0xf0]  ;;  %v2681_v34 = vor.u32 %v3548_v30, %v2680_v28  ;;  %1262 = vmatpush.bf16.msra.mxu0 %v2425_v29 }
  0x1b   :  { %v2408_v35 = vld [vmem:[#allocation3 + $0x80] sm:$0xf]  ;;  %v3480_v36 = vld [vmem:[#allocation3 + $0x8c] sm:$0xf0]  ;;  %v2809_v38 = vor.u32 %v3580_v32, %v2808_v31  ;;  %1275 = vmatpush.bf16.msra.mxu1 %v2553_v33  ;;  %v3490_v33 = vld [vmem:[#allocation3 + $0xe4] sm:$0xf] }
  0x1c   :  { %v2536_v37 = vld [vmem:[#allocation3 + $0x180] sm:$0xf]  ;;  %v3512_v39 = vld [vmem:[#allocation3 + $0x18c] sm:$0xf0]  ;;  %v2409_v44 = vor.u32 %v3480_v36, %v2408_v35  ;;  %1288 = vmatpush.bf16.msra.mxu2 %v2681_v34  ;;  %v2458_v34 = vld [vmem:[#allocation3 + $0xf0] sm:$0xf0] }
  0x1d   :  { %v2664_v40 = vld [vmem:[#allocation3 + $0x280] sm:$0xf]  ;;  %v3544_v41 = vld [vmem:[#allocation3 + $0x28c] sm:$0xf0]  ;;  %v2537_v45 = vor.u32 %v3512_v39, %v2536_v37  ;;  %1301 = vmatpush.bf16.msra.mxu3 %v2809_v38  ;;  %v3522_v37 = vld [vmem:[#allocation3 + $0x1e4] sm:$0xf] }
  0x1e   :  { %v2792_v42 = vld [vmem:[#allocation3 + $0x380] sm:$0xf]  ;;  %v3576_v43 = vld [vmem:[#allocation3 + $0x38c] sm:$0xf0]  ;;  %v2665_v46 = vor.u32 %v3544_v41, %v2664_v40  ;;  %1263 = vmatpush.bf16.msra.mxu0 %v2409_v44  ;;  %v2586_v38 = vld [vmem:[#allocation3 + $0x1f0] sm:$0xf0] }
  0x1f   :  { %v2392_v47 = vld [vmem:[#allocation3 + $0x60] sm:$0xf]  ;;  %v3476_v48 = vld [vmem:[#allocation3 + $0x6c] sm:$0xf0]  ;;  %v2793_v50 = vor.u32 %v3576_v43, %v2792_v42  ;;  %1276 = vmatpush.bf16.msra.mxu1 %v2537_v45  ;;  %v2461_v42 = vor.u32 %v3490_v33, %v2458_v34 }
  0x20   :  { %v2520_v49 = vld [vmem:[#allocation3 + $0x160] sm:$0xf]  ;;  %v3508_v51 = vld [vmem:[#allocation3 + $0x16c] sm:$0xf0]  ;;  %v2393_v56 = vor.u32 %v3476_v48, %v2392_v47  ;;  %1289 = vmatpush.bf16.msra.mxu2 %v2665_v46  ;;  %v2589_v46 = vor.u32 %v3522_v37, %v2586_v38  ;;  %v3486_v48 = vld [vmem:[#allocation3 + $0xc4] sm:$0xf] }
  0x21   :  { %v2648_v52 = vld [vmem:[#allocation3 + $0x260] sm:$0xf]  ;;  %v3540_v53 = vld [vmem:[#allocation3 + $0x26c] sm:$0xf0]  ;;  %v2521_v57 = vor.u32 %v3508_v51, %v2520_v49  ;;  %1302 = vmatpush.bf16.msra.mxu3 %v2793_v50  ;;  %v2442_v49 = vld [vmem:[#allocation3 + $0xd0] sm:$0xf0] }
  0x22   :  { %v2776_v54 = vld [vmem:[#allocation3 + $0x360] sm:$0xf]  ;;  %v3572_v55 = vld [vmem:[#allocation3 + $0x36c] sm:$0xf0]  ;;  %v2649_v58 = vor.u32 %v3540_v53, %v2648_v52  ;;  %1264 = vmatpush.bf16.msra.mxu0 %v2393_v56  ;;  %v3518_v50 = vld [vmem:[#allocation3 + $0x1c4] sm:$0xf] }
  0x23   :  { %v2376_v59 = vld [vmem:[#allocation3 + $0x40] sm:$0xf]  ;;  %v3472_v60 = vld [vmem:[#allocation3 + $0x4c] sm:$0xf0]  ;;  %v2777_v62 = vor.u32 %v3572_v55, %v2776_v54  ;;  %1277 = vmatpush.bf16.msra.mxu1 %v2521_v57  ;;  %v2570_v51 = vld [vmem:[#allocation3 + $0x1d0] sm:$0xf0]  ;;  %v2445_v55 = vor.u32 %v3486_v48, %v2442_v49 }
  0x24   :  { %v2504_v61 = vld [vmem:[#allocation3 + $0x140] sm:$0xf]  ;;  %v3504_v63 = vld [vmem:[#allocation3 + $0x14c] sm:$0xf0]  ;;  %v2377_v4 = vor.u32 %v3472_v60, %v2376_v59  ;;  %1290 = vmatpush.bf16.msra.mxu2 %v2649_v58  ;;  %v2573_v59 = vor.u32 %v3518_v50, %v2570_v51  ;;  %v3482_v60 = vld [vmem:[#allocation3 + $0xa4] sm:$0xf] }
  0x25   :  { %v2632_v0 = vld [vmem:[#allocation3 + $0x240] sm:$0xf]  ;;  %v3536_v1 = vld [vmem:[#allocation3 + $0x24c] sm:$0xf0]  ;;  %v2505_v5 = vor.u32 %v3504_v63, %v2504_v61  ;;  %1303 = vmatpush.bf16.msra.mxu3 %v2777_v62  ;;  %v2426_v61 = vld [vmem:[#allocation3 + $0xb0] sm:$0xf0] }
  0x26   :  { %v2760_v2 = vld [vmem:[#allocation3 + $0x340] sm:$0xf]  ;;  %v3568_v3 = vld [vmem:[#allocation3 + $0x34c] sm:$0xf0]  ;;  %v2633_v6 = vor.u32 %v3536_v1, %v2632_v0  ;;  %1265 = vmatpush.bf16.msra.mxu0 %v2377_v4  ;;  %v3514_v62 = vld [vmem:[#allocation3 + $0x1a4] sm:$0xf] }
  0x27   :  { %v2360_v7 = vld [vmem:[#allocation3 + $0x20] sm:$0xf]  ;;  %v3468_v8 = vld [vmem:[#allocation3 + $0x2c] sm:$0xf0]  ;;  %v2761_v10 = vor.u32 %v3568_v3, %v2760_v2  ;;  %1278 = vmatpush.bf16.msra.mxu1 %v2505_v5  ;;  %v2554_v63 = vld [vmem:[#allocation3 + $0x1b0] sm:$0xf0]  ;;  %v2429_v5 = vor.u32 %v3482_v60, %v2426_v61 }
  0x28   :  { %v2488_v9 = vld [vmem:[#allocation3 + $0x120] sm:$0xf]  ;;  %v3500_v11 = vld [vmem:[#allocation3 + $0x12c] sm:$0xf0]  ;;  %v2361_v16 = vor.u32 %v3468_v8, %v2360_v7  ;;  %1291 = vmatpush.bf16.msra.mxu2 %v2633_v6 }
  0x29   :  { %v2616_v12 = vld [vmem:[#allocation3 + $0x220] sm:$0xf]  ;;  %v3532_v13 = vld [vmem:[#allocation3 + $0x22c] sm:$0xf0]  ;;  %v2489_v19 = vor.u32 %v3500_v11, %v2488_v9  ;;  %1304 = vmatpush.bf16.msra.mxu3 %v2761_v10  ;;  %v89_v10 = vld [vmem:[%s4034_s0 + $0x18] sm:$0xff]  ;;  %v2557_v11 = vor.u32 %v3514_v62, %v2554_v63 }
  0x2a   :  { %v2744_v14 = vld [vmem:[#allocation3 + $0x320] sm:$0xf]  ;;  %v3564_v15 = vld [vmem:[#allocation3 + $0x32c] sm:$0xf0]  ;;  %v2617_v20 = vor.u32 %v3532_v13, %v2616_v12  ;;  %1266 = vmatpush.bf16.msra.mxu0 %v2361_v16  ;;  %v3478_v13 = vld [vmem:[#allocation3 + $0x84] sm:$0xf] }
  0x2b   :  { %v2344_v17 = vld [vmem:[#allocation3] sm:$0xf]  ;;  %v3464_v18 = vld [vmem:[#allocation3 + $0xc] sm:$0xf0]  ;;  %v2745_v24 = vor.u32 %v3564_v15, %v2744_v14  ;;  %1279 = vmatpush.bf16.msra.mxu1 %v2489_v19  ;;  %v2410_v14 = vld [vmem:[#allocation3 + $0x90] sm:$0xf0]  ;;  %v3923_v15 = vpack.c.bf16 %v89_v10, %v89_v10 }
  0x2c   :  { %v2472_v21 = vld [vmem:[#allocation3 + $0x100] sm:$0xf]  ;;  %v3496_v22 = vld [vmem:[#allocation3 + $0x10c] sm:$0xf0]  ;;  %v2345_v31 = vor.u32 %v3464_v18, %v2344_v17  ;;  %1292 = vmatpush.bf16.msra.mxu2 %v2617_v20  ;;  %v3510_v16 = vld [vmem:[#allocation3 + $0x184] sm:$0xf] }
  0x2d   :  { %v2600_v23 = vld [vmem:[#allocation3 + $0x200] sm:$0xf]  ;;  %v3528_v25 = vld [vmem:[#allocation3 + $0x20c] sm:$0xf0]  ;;  %v2473_v35 = vor.u32 %v3496_v22, %v2472_v21  ;;  %1305 = vmatpush.bf16.msra.mxu3 %v2745_v24  ;;  %v2538_v17 = vld [vmem:[#allocation3 + $0x190] sm:$0xf0]  ;;  %v2413_v21 = vor.u32 %v3478_v13, %v2410_v14 }
  0x2e   :  { %v2728_v26 = vld [vmem:[#allocation3 + $0x300] sm:$0xf]  ;;  %v3560_v27 = vld [vmem:[#allocation3 + $0x30c] sm:$0xf0]  ;;  %v2601_v36 = vor.u32 %v3528_v25, %v2600_v23  ;;  %1267 = vmatpush.bf16.msra.mxu0 %v2345_v31  ;;  %v87_v19 = vld [vmem:[%s4034_s0 + $0x8] sm:$0xff] }
  0x2f   :  { %v2968_v28 = vld [vmem:[#allocation3 + $0x4e0] sm:$0xf]  ;;  %v3620_v29 = vld [vmem:[#allocation3 + $0x4ec] sm:$0xf0]  ;;  %v2729_v39 = vor.u32 %v3560_v27, %v2728_v26  ;;  %1280 = vmatpush.bf16.msra.mxu1 %v2473_v35  ;;  %v3931_v25 = vpack.c.bf16 %v87_v19, %v87_v19  ;;  %v2541_v26 = vor.u32 %v3510_v16, %v2538_v17  ;;  %v2522_v31 = vld [vmem:[#allocation3 + $0x170] sm:$0xf0] }
  0x30   :  { %v3096_v30 = vld [vmem:[#allocation3 + $0x5e0] sm:$0xf]  ;;  %v3652_v32 = vld [vmem:[#allocation3 + $0x5ec] sm:$0xf0]  ;;  %v2969_v40 = vor.u32 %v3620_v29, %v2968_v28  ;;  %1293 = vmatpush.bf16.msra.mxu2 %v2601_v36  ;;  %v3474_v28 = vld [vmem:[#allocation3 + $0x64] sm:$0xf] }
  0x31   :  { %v3097_v41 = vor.u32 %v3652_v32, %v3096_v30  ;;  %v2952_v43 = vld [vmem:[#allocation3 + $0x4c0] sm:$0xf]  ;;  %v3616_v44 = vld [vmem:[#allocation3 + $0x4cc] sm:$0xf0]  ;;  %1306 = vmatpush.bf16.msra.mxu3 %v2729_v39  ;;  %v2394_v29 = vld [vmem:[#allocation3 + $0x70] sm:$0xf0] }
  0x32   :  { %v3080_v45 = vld [vmem:[#allocation3 + $0x5c0] sm:$0xf]  ;;  %v3648_v47 = vld [vmem:[#allocation3 + $0x5cc] sm:$0xf0]  ;;  %1312 = vmatpush.bf16.msrb.mxu0 %v2969_v40  ;;  %v2953_v52 = vor.u32 %v3616_v44, %v2952_v43  ;;  %v3506_v30 = vld [vmem:[#allocation3 + $0x164] sm:$0xf]  ;;  %1281 = vmatmul.bf16.vlgmr.msra.gmra.mxu1 %v3931_v25  ;;  %v2397_v34 = vor.u32 %v3474_v28, %v2394_v29 }
  0x33   :  { %v2936_v53 = vld [vmem:[#allocation3 + $0x4a0] sm:$0xf]  ;;  %1325 = vmatpush.bf16.msrb.mxu1 %v3097_v41  ;;  %v3081_v54 = vor.u32 %v3648_v47, %v3080_v45  ;;  %v3612_v56 = vld [vmem:[#allocation3 + $0x4ac] sm:$0xf0]  ;;  %v2525_v38 = vor.u32 %v3506_v30, %v2522_v31  ;;  %v3470_v40 = vld [vmem:[#allocation3 + $0x44] sm:$0xf] }
  0x34   :  { %1338 = vmatpush.bf16.msrb.mxu2 %v2461_v42  ;;  %v3064_v57 = vld [vmem:[#allocation3 + $0x5a0] sm:$0xf]  ;;  %v3644_v58 = vld [vmem:[#allocation3 + $0x5ac] sm:$0xf0]  ;;  %v2937_v0 = vor.u32 %v3612_v56, %v2936_v53  ;;  %1307 = vmatmul.bf16.vlgmr.msra.gmra.mxu3 %v3923_v15  ;;  %v2378_v41 = vld [vmem:[#allocation3 + $0x50] sm:$0xf0] }
  0x35   :  { %1351 = vmatpush.bf16.msrb.mxu3 %v2589_v46  ;;  %v3065_v1 = vor.u32 %v3644_v58, %v3064_v57  ;;  %v2920_v2 = vld [vmem:[#allocation3 + $0x480] sm:$0xf]  ;;  %v88_v3 = vld [vmem:[%s4034_s0 + $0x10] sm:$0xff]  ;;  %v3502_v42 = vld [vmem:[#allocation3 + $0x144] sm:$0xf]  ;;  %v2381_v46 = vor.u32 %v3470_v40, %v2378_v41 }
  0x36   :  { %1313 = vmatpush.bf16.msrb.mxu0 %v2953_v52  ;;  %v86_v4 = vld [vmem:[%s4034_s0] sm:$0xff]  ;;  %v3608_v6 = vld [vmem:[#allocation3 + $0x48c] sm:$0xf0]  ;;  %v3916_v8 = vpack.c.bf16 %v88_v3, %v88_v3  ;;  %v2506_v43 = vld [vmem:[#allocation3 + $0x150] sm:$0xf0] }
  0x37   :  { %1326 = vmatpush.bf16.msrb.mxu1 %v3081_v54  ;;  %v3048_v7 = vld [vmem:[#allocation3 + $0x580] sm:$0xf]  ;;  %v3918_v9 = vpack.c.bf16 %v86_v4, %v86_v4  ;;  %v3640_v12 = vld [vmem:[#allocation3 + $0x58c] sm:$0xf0]  ;;  %v2921_v18 = vor.u32 %v3608_v6, %v2920_v2  ;;  %v2509_v50 = vor.u32 %v3502_v42, %v2506_v43  ;;  %v3466_v52 = vld [vmem:[#allocation3 + $0x24] sm:$0xf] }
  0x38   :  { %1339 = vmatpush.bf16.msrb.mxu2 %v2445_v55  ;;  %v3049_v20 = vor.u32 %v3640_v12, %v3048_v7  ;;  %v2904_v22 = vld [vmem:[#allocation3 + $0x460] sm:$0xf]  ;;  %v3604_v23 = vld [vmem:[#allocation3 + $0x46c] sm:$0xf0]  ;;  %v2362_v53 = vld [vmem:[#allocation3 + $0x30] sm:$0xf0] }
  0x39   :  { %1352 = vmatpush.bf16.msrb.mxu3 %v2573_v59  ;;  %1294 = vmatmul.bf16.vlgmr.msra.gmra.mxu2 %v3916_v8  ;;  %v3032_v24 = vld [vmem:[#allocation3 + $0x560] sm:$0xf]  ;;  %v3636_v27 = vld [vmem:[#allocation3 + $0x56c] sm:$0xf0]  ;;  %v2905_v32 = vor.u32 %v3604_v23, %v2904_v22  ;;  %v3498_v54 = vld [vmem:[#allocation3 + $0x124] sm:$0xf]  ;;  %v2365_v60 = vor.u32 %v3466_v52, %v2362_v53 }
  0x3a   :  { %1268 = vmatmul.bf16.vlgmr.msra.gmra.mxu0 %v3918_v9  ;;  %v3033_v33 = vor.u32 %v3636_v27, %v3032_v24  ;;  %v2888_v35 = vld [vmem:[#allocation3 + $0x440] sm:$0xf]  ;;  %v3600_v36 = vld [vmem:[#allocation3 + $0x44c] sm:$0xf0]  ;;  %v2490_v55 = vld [vmem:[#allocation3 + $0x130] sm:$0xf0] }
  0x3b   :  { %1314 = vmatpush.bf16.msrb.mxu0 %v2937_v0  ;;  %1327 = vmatpush.bf16.msrb.mxu1 %v3065_v1  ;;  %v3016_v37 = vld [vmem:[#allocation3 + $0x540] sm:$0xf]  ;;  %v3632_v39 = vld [vmem:[#allocation3 + $0x54c] sm:$0xf0]  ;;  %v2889_v44 = vor.u32 %v3600_v36, %v2888_v35  ;;  %v3462_v63 = vld [vmem:[#allocation3 + $0x4] sm:$0xf]  ;;  %v2493_v0 = vor.u32 %v3498_v54, %v2490_v55 }
  0x3c   :  { %1340 = vmatpush.bf16.msrb.mxu2 %v2429_v5  ;;  %v3017_v45 = vor.u32 %v3632_v39, %v3016_v37  ;;  %v2872_v47 = vld [vmem:[#allocation3 + $0x420] sm:$0xf]  ;;  %v3596_v48 = vld [vmem:[#allocation3 + $0x42c] sm:$0xf0]  ;;  %v2346_v1 = vld [vmem:[#allocation3 + $0x10] sm:$0xf0] }
  0x3d   :  { %1353 = vmatpush.bf16.msrb.mxu3 %v2557_v11  ;;  %v3000_v49 = vld [vmem:[#allocation3 + $0x520] sm:$0xf]  ;;  %v3628_v51 = vld [vmem:[#allocation3 + $0x52c] sm:$0xf0]  ;;  %v2873_v56 = vor.u32 %v3596_v48, %v2872_v47  ;;  %v3494_v2 = vld [vmem:[#allocation3 + $0x104] sm:$0xf]  ;;  %v2349_v14 = vor.u32 %v3462_v63, %v2346_v1 }
  0x3e   :  { %v2856_v57 = vld [vmem:[#allocation3 + $0x400] sm:$0xf]  ;;  %v3592_v58 = vld [vmem:[#allocation3 + $0x40c] sm:$0xf0]  ;;  %v3001_v59 = vor.u32 %v3628_v51, %v3000_v49  ;;  %v2474_v3 = vld [vmem:[#allocation3 + $0x110] sm:$0xf0] }
  0x3f   :  { %1315 = vmatpush.bf16.msrb.mxu0 %v2921_v18  ;;  %1328 = vmatpush.bf16.msrb.mxu1 %v3049_v20  ;;  %v2984_v61 = vld [vmem:[#allocation3 + $0x500] sm:$0xf]  ;;  %v3624_v62 = vld [vmem:[#allocation3 + $0x50c] sm:$0xf0]  ;;  %v3554_v4 = vld [vmem:[#allocation3 + $0x2e4] sm:$0xf]  ;;  %v2857_v7 = vor.u32 %v3592_v58, %v2856_v57  ;;  %v2477_v19 = vor.u32 %v3494_v2, %v2474_v3 }
  0x40   :  { %1341 = vmatpush.bf16.msrb.mxu2 %v2413_v21  ;;  %v2714_v5 = vld [vmem:[#allocation3 + $0x2f0] sm:$0xf0]  ;;  %v3586_v6 = vld [vmem:[#allocation3 + $0x3e4] sm:$0xf]  ;;  %v2985_v13 = vor.u32 %v3624_v62, %v2984_v61  ;;  %v91_v21 = vld [vmem:[%s4034_s0 + $0x28] sm:$0xff] }
  0x41   :  { %1354 = vmatpush.bf16.msrb.mxu3 %v2541_v26  ;;  %v2842_v10 = vld [vmem:[#allocation3 + $0x3f0] sm:$0xf0]  ;;  %v3618_v11 = vld [vmem:[#allocation3 + $0x4e4] sm:$0xf]  ;;  %v2717_v20 = vor.u32 %v3554_v4, %v2714_v5  ;;  %v3942_v35 = vpack.c.bf16 %v91_v21, %v91_v21 }
  0x42   :  { %v2970_v12 = vld [vmem:[#allocation3 + $0x4f0] sm:$0xf0]  ;;  %v3650_v16 = vld [vmem:[#allocation3 + $0x5e4] sm:$0xf]  ;;  %v2845_v22 = vor.u32 %v3586_v6, %v2842_v10 }
  0x43   :  { %1316 = vmatpush.bf16.msrb.mxu0 %v2905_v32  ;;  %1329 = vmatpush.bf16.msrb.mxu1 %v3033_v33  ;;  %v3098_v17 = vld [vmem:[#allocation3 + $0x5f0] sm:$0xf0]  ;;  %v90_v18 = vld [vmem:[%s4034_s0 + $0x20] sm:$0xff]  ;;  %v2973_v23 = vor.u32 %v3618_v11, %v2970_v12 }
  0x44   :  { %1342 = vmatpush.bf16.msrb.mxu2 %v2397_v34  ;;  %v3550_v24 = vld [vmem:[#allocation3 + $0x2c4] sm:$0xf]  ;;  %v2698_v26 = vld [vmem:[#allocation3 + $0x2d0] sm:$0xf0]  ;;  %v3101_v28 = vor.u32 %v3650_v16, %v3098_v17  ;;  %v3940_v32 = vpack.c.bf16 %v90_v18, %v90_v18 }
  0x45   :  { %1355 = vmatpush.bf16.msrb.mxu3 %v2525_v38  ;;  %v3582_v27 = vld [vmem:[#allocation3 + $0x3c4] sm:$0xf]  ;;  %v2826_v29 = vld [vmem:[#allocation3 + $0x3d0] sm:$0xf0]  ;;  %v2701_v36 = vor.u32 %v3550_v24, %v2698_v26 }
  0x46   :  { %v3614_v30 = vld [vmem:[#allocation3 + $0x4c4] sm:$0xf]  ;;  %v2954_v31 = vld [vmem:[#allocation3 + $0x4d0] sm:$0xf0]  ;;  %v2829_v37 = vor.u32 %v3582_v27, %v2826_v29 }
  0x47   :  { %1317 = vmatpush.bf16.msrb.mxu0 %v2889_v44  ;;  %1330 = vmatpush.bf16.msrb.mxu1 %v3017_v45  ;;  %v3646_v33 = vld [vmem:[#allocation3 + $0x5c4] sm:$0xf]  ;;  %v3082_v34 = vld [vmem:[#allocation3 + $0x5d0] sm:$0xf0]  ;;  %v2957_v38 = vor.u32 %v3614_v30, %v2954_v31 }
  0x48   :  { %1343 = vmatpush.bf16.msrb.mxu2 %v2381_v46  ;;  %v3546_v39 = vld [vmem:[#allocation3 + $0x2a4] sm:$0xf]  ;;  %v2682_v40 = vld [vmem:[#allocation3 + $0x2b0] sm:$0xf0]  ;;  %v3085_v42 = vor.u32 %v3646_v33, %v3082_v34 }
  0x49   :  { %1356 = vmatpush.bf16.msrb.mxu3 %v2509_v50  ;;  %v3578_v41 = vld [vmem:[#allocation3 + $0x3a4] sm:$0xf]  ;;  %v2810_v43 = vld [vmem:[#allocation3 + $0x3b0] sm:$0xf0]  ;;  %v2685_v48 = vor.u32 %v3546_v39, %v2682_v40 }
  0x4a   :  { %v3610_v44 = vld [vmem:[#allocation3 + $0x4a4] sm:$0xf]  ;;  %v2938_v45 = vld [vmem:[#allocation3 + $0x4b0] sm:$0xf0]  ;;  %v2813_v49 = vor.u32 %v3578_v41, %v2810_v43 }
  0x4b   :  { %1318 = vmatpush.bf16.msrb.mxu0 %v2873_v56  ;;  %1331 = vmatpush.bf16.msrb.mxu1 %v3001_v59  ;;  %v3642_v46 = vld [vmem:[#allocation3 + $0x5a4] sm:$0xf]  ;;  %v3066_v47 = vld [vmem:[#allocation3 + $0x5b0] sm:$0xf0]  ;;  %v2941_v50 = vor.u32 %v3610_v44, %v2938_v45 }
  0x4c   :  { %1344 = vmatpush.bf16.msrb.mxu2 %v2365_v60  ;;  %v3542_v51 = vld [vmem:[#allocation3 + $0x284] sm:$0xf]  ;;  %v2666_v52 = vld [vmem:[#allocation3 + $0x290] sm:$0xf0]  ;;  %v3069_v54 = vor.u32 %v3642_v46, %v3066_v47 }
  0x4d   :  { %1357 = vmatpush.bf16.msrb.mxu3 %v2493_v0  ;;  %v3574_v53 = vld [vmem:[#allocation3 + $0x384] sm:$0xf]  ;;  %v2794_v55 = vld [vmem:[#allocation3 + $0x390] sm:$0xf0]  ;;  %v2669_v60 = vor.u32 %v3542_v51, %v2666_v52  ;;  %v3493_v51 = vld [vmem:[#allocation3 + $0xf4] sm:$0xf0] }
  0x4e   :  { %v3606_v56 = vld [vmem:[#allocation3 + $0x484] sm:$0xf]  ;;  %v2922_v57 = vld [vmem:[#allocation3 + $0x490] sm:$0xf0]  ;;  %v2797_v61 = vor.u32 %v3574_v53, %v2794_v55  ;;  %v2592_v52 = vld [vmem:[#allocation3 + $0x1e8] sm:$0xf] }
  0x4f   :  { %1319 = vmatpush.bf16.msrb.mxu0 %v2857_v7  ;;  %1332 = vmatpush.bf16.msrb.mxu1 %v2985_v13  ;;  %v3638_v58 = vld [vmem:[#allocation3 + $0x584] sm:$0xf]  ;;  %v3050_v59 = vld [vmem:[#allocation3 + $0x590] sm:$0xf0]  ;;  %v2925_v62 = vor.u32 %v3606_v56, %v2922_v57  ;;  %v2720_v55 = vld [vmem:[#allocation3 + $0x2e8] sm:$0xf] }
  0x50   :  { %1345 = vmatpush.bf16.msrb.mxu2 %v2349_v14  ;;  %v3538_v63 = vld [vmem:[#allocation3 + $0x264] sm:$0xf]  ;;  %v2650_v0 = vld [vmem:[#allocation3 + $0x270] sm:$0xf0]  ;;  %v3053_v2 = vor.u32 %v3638_v58, %v3050_v59  ;;  %v3557_v56 = vld [vmem:[#allocation3 + $0x2f4] sm:$0xf0] }
  0x51   :  { %1358 = vmatpush.bf16.msrb.mxu3 %v2477_v19  ;;  %v3570_v1 = vld [vmem:[#allocation3 + $0x364] sm:$0xf]  ;;  %v2778_v3 = vld [vmem:[#allocation3 + $0x370] sm:$0xf0]  ;;  %v2653_v10 = vor.u32 %v3538_v63, %v2650_v0  ;;  %v2848_v59 = vld [vmem:[#allocation3 + $0x3e8] sm:$0xf]  ;;  %v2721_v0 = vor.u32 %v3557_v56, %v2720_v55 }
  0x52   :  { %1320 = vmatmul.bf16.vlgmr.msrb.gmra.mxu0 %v3940_v32  ;;  %1333 = vmatmul.bf16.vlgmr.msrb.gmra.mxu1 %v3942_v35  ;;  %v3602_v4 = vld [vmem:[#allocation3 + $0x464] sm:$0xf]  ;;  %v2906_v5 = vld [vmem:[#allocation3 + $0x470] sm:$0xf0]  ;;  %v2781_v11 = vor.u32 %v3570_v1, %v2778_v3  ;;  %v2448_v1 = vld [vmem:[#allocation3 + $0xc8] sm:$0xf] }
  0x53   :  { %1364 = vmatpush.bf16.msra.mxu0 %v2717_v20  ;;  %1377 = vmatpush.bf16.msra.mxu1 %v2845_v22  ;;  %v3634_v6 = vld [vmem:[#allocation3 + $0x564] sm:$0xf]  ;;  %v3034_v7 = vld [vmem:[#allocation3 + $0x570] sm:$0xf0]  ;;  %v2909_v12 = vor.u32 %v3602_v4, %v2906_v5  ;;  %v2576_v3 = vld [vmem:[#allocation3 + $0x1c8] sm:$0xf] }
  0x54   :  { %1390 = vmatpush.bf16.msra.mxu2 %v2973_v23  ;;  %1359 = vmatmul.bf16.vlgmr.msrb.gmra.mxu3 %v3931_v25  ;;  %v3534_v13 = vld [vmem:[#allocation3 + $0x244] sm:$0xf]  ;;  %v2634_v14 = vld [vmem:[#allocation3 + $0x250] sm:$0xf0]  ;;  %v3037_v17 = vor.u32 %v3634_v6, %v3034_v7  ;;  %v3521_v5 = vld [vmem:[#allocation3 + $0x1d4] sm:$0xf0] }
  0x55   :  { %1403 = vmatpush.bf16.msra.mxu3 %v3101_v28  ;;  %1346 = vmatmul.bf16.vlgmr.msrb.gmra.mxu2 %v3918_v9  ;;  %v3566_v16 = vld [vmem:[#allocation3 + $0x344] sm:$0xf]  ;;  %v2762_v18 = vld [vmem:[#allocation3 + $0x350] sm:$0xf0]  ;;  %v2637_v23 = vor.u32 %v3534_v13, %v2634_v14  ;;  %v2704_v6 = vld [vmem:[#allocation3 + $0x2c8] sm:$0xf]  ;;  %v2577_v13 = vor.u32 %v3521_v5, %v2576_v3 }
  0x56   :  { %v3598_v19 = vld [vmem:[#allocation3 + $0x444] sm:$0xf]  ;;  %v2890_v20 = vld [vmem:[#allocation3 + $0x450] sm:$0xf0]  ;;  %v2765_v27 = vor.u32 %v3566_v16, %v2762_v18  ;;  %v3553_v7 = vld [vmem:[#allocation3 + $0x2d4] sm:$0xf0] }
  0x57   :  { %1365 = vmatpush.bf16.msra.mxu0 %v2701_v36  ;;  %1378 = vmatpush.bf16.msra.mxu1 %v2829_v37  ;;  %v3630_v21 = vld [vmem:[#allocation3 + $0x544] sm:$0xf]  ;;  %v3018_v22 = vld [vmem:[#allocation3 + $0x550] sm:$0xf0]  ;;  %v2893_v28 = vor.u32 %v3598_v19, %v2890_v20  ;;  %v2705_v14 = vor.u32 %v3553_v7, %v2704_v6  ;;  %v2432_v16 = vld [vmem:[#allocation3 + $0xa8] sm:$0xf] }
  0x58   :  { %1391 = vmatpush.bf16.msra.mxu2 %v2957_v38  ;;  %v3530_v24 = vld [vmem:[#allocation3 + $0x224] sm:$0xf]  ;;  %v2618_v26 = vld [vmem:[#allocation3 + $0x230] sm:$0xf0]  ;;  %v3021_v33 = vor.u32 %v3630_v21, %v3018_v22  ;;  %v2560_v18 = vld [vmem:[#allocation3 + $0x1a8] sm:$0xf] }
  0x59   :  { %1404 = vmatpush.bf16.msra.mxu3 %v3085_v42  ;;  %v3562_v29 = vld [vmem:[#allocation3 + $0x324] sm:$0xf]  ;;  %v2746_v30 = vld [vmem:[#allocation3 + $0x330] sm:$0xf0]  ;;  %v2621_v38 = vor.u32 %v3530_v24, %v2618_v26  ;;  %v3517_v20 = vld [vmem:[#allocation3 + $0x1b4] sm:$0xf0] }
  0x5a   :  { %v3594_v31 = vld [vmem:[#allocation3 + $0x424] sm:$0xf]  ;;  %v2874_v34 = vld [vmem:[#allocation3 + $0x430] sm:$0xf0]  ;;  %v2749_v41 = vor.u32 %v3562_v29, %v2746_v30  ;;  %v2688_v21 = vld [vmem:[#allocation3 + $0x2a8] sm:$0xf] }
  0x5b   :  { %1366 = vmatpush.bf16.msra.mxu0 %v2685_v48  ;;  %1379 = vmatpush.bf16.msra.mxu1 %v2813_v49  ;;  %v3626_v36 = vld [vmem:[#allocation3 + $0x524] sm:$0xf]  ;;  %v3002_v37 = vld [vmem:[#allocation3 + $0x530] sm:$0xf0]  ;;  %v2877_v42 = vor.u32 %v3594_v31, %v2874_v34  ;;  %v3549_v22 = vld [vmem:[#allocation3 + $0x2b4] sm:$0xf0] }
  0x5c   :  { %1392 = vmatpush.bf16.msra.mxu2 %v2941_v50  ;;  %v3526_v39 = vld [vmem:[#allocation3 + $0x204] sm:$0xf]  ;;  %v2602_v40 = vld [vmem:[#allocation3 + $0x210] sm:$0xf0]  ;;  %v3005_v46 = vor.u32 %v3626_v36, %v3002_v37  ;;  %v2464_v50 = vld [vmem:[#allocation3 + $0xe8] sm:$0xf] }
  0x5d   :  { %1405 = vmatpush.bf16.msra.mxu3 %v3069_v54  ;;  %v3558_v43 = vld [vmem:[#allocation3 + $0x304] sm:$0xf]  ;;  %v2730_v44 = vld [vmem:[#allocation3 + $0x310] sm:$0xf0]  ;;  %v2605_v53 = vor.u32 %v3526_v39, %v2602_v40  ;;  %v3525_v54 = vld [vmem:[#allocation3 + $0x1f4] sm:$0xf0] }
  0x5e   :  { %v3590_v45 = vld [vmem:[#allocation3 + $0x404] sm:$0xf]  ;;  %v2858_v47 = vld [vmem:[#allocation3 + $0x410] sm:$0xf0]  ;;  %v2733_v57 = vor.u32 %v3558_v43, %v2730_v44  ;;  %v2593_v63 = vor.u32 %v3525_v54, %v2592_v52  ;;  %v3581_v24 = vld [vmem:[#allocation3 + $0x3b4] sm:$0xf0] }
  0x5f   :  { %1367 = vmatpush.bf16.msra.mxu0 %v2669_v60  ;;  %1380 = vmatpush.bf16.msra.mxu1 %v2797_v61  ;;  %v3622_v48 = vld [vmem:[#allocation3 + $0x504] sm:$0xf]  ;;  %v2986_v49 = vld [vmem:[#allocation3 + $0x510] sm:$0xf0]  ;;  %v2861_v58 = vor.u32 %v3590_v45, %v2858_v47  ;;  %v3589_v60 = vld [vmem:[#allocation3 + $0x3f4] sm:$0xf0] }
  0x60   :  { %1393 = vmatpush.bf16.msra.mxu2 %v2925_v62  ;;  %v2989_v61 = vor.u32 %v3622_v48, %v2986_v49  ;;  %v2465_v62 = vor.u32 %v3493_v51, %v2464_v50  ;;  %v2849_v4 = vor.u32 %v3589_v60, %v2848_v59  ;;  %v2416_v29 = vld [vmem:[#allocation3 + $0x88] sm:$0xf]  ;;  %v3481_v30 = vld [vmem:[#allocation3 + $0x94] sm:$0xf0] }
  0x61   :  { %1406 = vmatpush.bf16.msra.mxu3 %v3053_v2  ;;  %v3489_v2 = vld [vmem:[#allocation3 + $0xd4] sm:$0xf0]  ;;  %v2544_v31 = vld [vmem:[#allocation3 + $0x188] sm:$0xf]  ;;  %v2417_v40 = vor.u32 %v3481_v30, %v2416_v29 }
  0x62   :  { %v3513_v34 = vld [vmem:[#allocation3 + $0x194] sm:$0xf0]  ;;  %v2672_v36 = vld [vmem:[#allocation3 + $0x288] sm:$0xf] }
  0x63   :  { %1368 = vmatpush.bf16.msra.mxu0 %v2653_v10  ;;  %1381 = vmatpush.bf16.msra.mxu1 %v2781_v11  ;;  %v2832_v10 = vld [vmem:[#allocation3 + $0x3c8] sm:$0xf]  ;;  %v3585_v11 = vld [vmem:[#allocation3 + $0x3d4] sm:$0xf0] }
  0x64   :  { %1394 = vmatpush.bf16.msra.mxu2 %v2909_v12  ;;  %v2449_v12 = vor.u32 %v3489_v2, %v2448_v1  ;;  %v2833_v19 = vor.u32 %v3585_v11, %v2832_v10  ;;  %v3545_v37 = vld [vmem:[#allocation3 + $0x294] sm:$0xf0]  ;;  %v2400_v43 = vld [vmem:[#allocation3 + $0x68] sm:$0xf] }
  0x65   :  { %1407 = vmatpush.bf16.msra.mxu3 %v3037_v17  ;;  %v3485_v17 = vld [vmem:[#allocation3 + $0xb4] sm:$0xf0]  ;;  %v2528_v45 = vld [vmem:[#allocation3 + $0x168] sm:$0xf] }
  0x66   :  { %v2433_v26 = vor.u32 %v3485_v17, %v2432_v16  ;;  %v3577_v39 = vld [vmem:[#allocation3 + $0x394] sm:$0xf0]  ;;  %v2656_v48 = vld [vmem:[#allocation3 + $0x268] sm:$0xf] }
  0x67   :  { %1369 = vmatpush.bf16.msra.mxu0 %v2637_v23  ;;  %1382 = vmatpush.bf16.msra.mxu1 %v2765_v27  ;;  %v2816_v23 = vld [vmem:[#allocation3 + $0x3a8] sm:$0xf]  ;;  %v2561_v27 = vor.u32 %v3517_v20, %v2560_v18  ;;  %v3477_v44 = vld [vmem:[#allocation3 + $0x74] sm:$0xf0] }
  0x68   :  { %1395 = vmatpush.bf16.msra.mxu2 %v2893_v28  ;;  %v2689_v28 = vor.u32 %v3549_v22, %v2688_v21  ;;  %v3509_v47 = vld [vmem:[#allocation3 + $0x174] sm:$0xf0]  ;;  %v2784_v50 = vld [vmem:[#allocation3 + $0x368] sm:$0xf]  ;;  %v2401_v52 = vor.u32 %v3477_v44, %v2400_v43 }
  0x69   :  { %1408 = vmatpush.bf16.msra.mxu3 %v3021_v33  ;;  %v2817_v33 = vor.u32 %v3581_v24, %v2816_v23  ;;  %v3541_v49 = vld [vmem:[#allocation3 + $0x274] sm:$0xf0]  ;;  %v2384_v55 = vld [vmem:[#allocation3 + $0x48] sm:$0xf] }
  0x6a   :  { %v3573_v51 = vld [vmem:[#allocation3 + $0x374] sm:$0xf0]  ;;  %v2657_v54 = vor.u32 %v3541_v49, %v2656_v48  ;;  %v2640_v60 = vld [vmem:[#allocation3 + $0x248] sm:$0xf] }
  0x6b   :  { %1370 = vmatpush.bf16.msra.mxu0 %v2621_v38  ;;  %1383 = vmatpush.bf16.msra.mxu1 %v2749_v41  ;;  %v2800_v38 = vld [vmem:[#allocation3 + $0x388] sm:$0xf]  ;;  %v2545_v41 = vor.u32 %v3513_v34, %v2544_v31  ;;  %v3473_v56 = vld [vmem:[#allocation3 + $0x54] sm:$0xf0]  ;;  %v3491_v34 = vld [vmem:[#allocation3 + $0xec] sm:$0xf] }
  0x6c   :  { %1396 = vmatpush.bf16.msra.mxu2 %v2877_v42  ;;  %v2673_v42 = vor.u32 %v3545_v37, %v2672_v36  ;;  %v3505_v59 = vld [vmem:[#allocation3 + $0x154] sm:$0xf0]  ;;  %v2368_v3 = vld [vmem:[#allocation3 + $0x28] sm:$0xf]  ;;  %v2466_v36 = vld [vmem:[#allocation3 + $0xf8] sm:$0xf0] }
  0x6d   :  { %1409 = vmatpush.bf16.msra.mxu3 %v3005_v46  ;;  %v2801_v46 = vor.u32 %v3577_v39, %v2800_v38  ;;  %v2496_v5 = vld [vmem:[#allocation3 + $0x128] sm:$0xf]  ;;  %v3501_v7 = vld [vmem:[#allocation3 + $0x134] sm:$0xf0]  ;;  %v3523_v39 = vld [vmem:[#allocation3 + $0x1ec] sm:$0xf]  ;;  %v2469_v44 = vor.u32 %v3491_v34, %v2466_v36 }
  0x6e   :  { %v2624_v10 = vld [vmem:[#allocation3 + $0x228] sm:$0xf]  ;;  %v3533_v11 = vld [vmem:[#allocation3 + $0x234] sm:$0xf0]  ;;  %v2497_v18 = vor.u32 %v3501_v7, %v2496_v5 }
  0x6f   :  { %1371 = vmatpush.bf16.msra.mxu0 %v2605_v53  ;;  %1384 = vmatpush.bf16.msra.mxu1 %v2733_v57  ;;  %v2529_v53 = vor.u32 %v3509_v47, %v2528_v45  ;;  %v2512_v57 = vld [vmem:[#allocation3 + $0x148] sm:$0xf]  ;;  %v3465_v17 = vld [vmem:[#allocation3 + $0x14] sm:$0xf0] }
  0x70   :  { %1397 = vmatpush.bf16.msra.mxu2 %v2861_v58  ;;  %v2785_v58 = vor.u32 %v3573_v51, %v2784_v50  ;;  %v2513_v1 = vor.u32 %v3505_v59, %v2512_v57  ;;  %v2352_v16 = vld [vmem:[#allocation3 + $0x8] sm:$0xf]  ;;  %v3497_v21 = vld [vmem:[#allocation3 + $0x114] sm:$0xf0]  ;;  %v3487_v50 = vld [vmem:[#allocation3 + $0xcc] sm:$0xf] }
  0x71   :  { %1410 = vmatpush.bf16.msra.mxu3 %v2989_v61  ;;  %v3537_v61 = vld [vmem:[#allocation3 + $0x254] sm:$0xf0]  ;;  %v2480_v20 = vld [vmem:[#allocation3 + $0x108] sm:$0xf]  ;;  %v2353_v31 = vor.u32 %v3465_v17, %v2352_v16  ;;  %v2450_v51 = vld [vmem:[#allocation3 + $0xd8] sm:$0xf0] }
  0x72   :  { %1372 = vmatmul.bf16.vlgmr.msra.gmra.mxu0 %v3916_v8  ;;  %1385 = vmatmul.bf16.vlgmr.msra.gmra.mxu1 %v3923_v15  ;;  %v2641_v2 = vor.u32 %v3537_v61, %v2640_v60  ;;  %v2608_v22 = vld [vmem:[#allocation3 + $0x208] sm:$0xf]  ;;  %v3529_v24 = vld [vmem:[#allocation3 + $0x214] sm:$0xf0]  ;;  %v2481_v37 = vor.u32 %v3497_v21, %v2480_v20  ;;  %v2546_v16 = vld [vmem:[#allocation3 + $0x198] sm:$0xf0] }
  0x73   :  { %1416 = vmatpush.bf16.msrb.mxu0 %v2465_v62  ;;  %1429 = vmatpush.bf16.msrb.mxu1 %v2593_v63  ;;  %v2768_v62 = vld [vmem:[#allocation3 + $0x348] sm:$0xf]  ;;  %v3569_v63 = vld [vmem:[#allocation3 + $0x354] sm:$0xf0]  ;;  %v2609_v38 = vor.u32 %v3529_v24, %v2608_v22 }
  0x74   :  { %1442 = vmatpush.bf16.msrb.mxu2 %v2721_v0  ;;  %1411 = vmatmul.bf16.vlgmr.msra.gmra.mxu3 %v3942_v35  ;;  %v2385_v0 = vor.u32 %v3473_v56, %v2384_v55  ;;  %v2769_v6 = vor.u32 %v3569_v63, %v2768_v62  ;;  %v3621_v29 = vld [vmem:[#allocation3 + $0x4f4] sm:$0xf0]  ;;  %v3104_v30 = vld [vmem:[#allocation3 + $0x5e8] sm:$0xf]  ;;  %v2453_v56 = vor.u32 %v3487_v50, %v2450_v51  ;;  %v3483_v62 = vld [vmem:[#allocation3 + $0xac] sm:$0xf] }
  0x75   :  { %1455 = vmatpush.bf16.msrb.mxu3 %v2849_v4  ;;  %1398 = vmatmul.bf16.vlgmr.msra.gmra.mxu2 %v3940_v32  ;;  %v3469_v4 = vld [vmem:[#allocation3 + $0x34] sm:$0xf0]  ;;  %v2960_v45 = vld [vmem:[#allocation3 + $0x4c8] sm:$0xf]  ;;  %v2434_v63 = vld [vmem:[#allocation3 + $0xb8] sm:$0xf0] }
  0x76   :  { %v3088_v47 = vld [vmem:[#allocation3 + $0x5c8] sm:$0xf]  ;;  %v3649_v49 = vld [vmem:[#allocation3 + $0x5d4] sm:$0xf0] }
  0x77   :  { %1417 = vmatpush.bf16.msrb.mxu0 %v2449_v12  ;;  %1430 = vmatpush.bf16.msrb.mxu1 %v2577_v13  ;;  %v2752_v12 = vld [vmem:[#allocation3 + $0x328] sm:$0xf]  ;;  %v3565_v13 = vld [vmem:[#allocation3 + $0x334] sm:$0xf0]  ;;  %v3089_v55 = vor.u32 %v3649_v49, %v3088_v47 }
  0x78   :  { %1443 = vmatpush.bf16.msrb.mxu2 %v2705_v14  ;;  %v2369_v14 = vor.u32 %v3469_v4, %v2368_v3  ;;  %v2753_v23 = vor.u32 %v3565_v13, %v2752_v12  ;;  %v2944_v57 = vld [vmem:[#allocation3 + $0x4a8] sm:$0xf]  ;;  %v3645_v61 = vld [vmem:[#allocation3 + $0x5b4] sm:$0xf0]  ;;  %v2437_v4 = vor.u32 %v3483_v62, %v2434_v63  ;;  %v3479_v12 = vld [vmem:[#allocation3 + $0x8c] sm:$0xf] }
  0x79   :  { %1456 = vmatpush.bf16.msrb.mxu3 %v2833_v19  ;;  %v2625_v19 = vor.u32 %v3533_v11, %v2624_v10  ;;  %v3072_v59 = vld [vmem:[#allocation3 + $0x5a8] sm:$0xf]  ;;  %v3641_v11 = vld [vmem:[#allocation3 + $0x594] sm:$0xf0]  ;;  %v2418_v13 = vld [vmem:[#allocation3 + $0x98] sm:$0xf0] }
  0x7a   :  { %v3073_v3 = vor.u32 %v3645_v61, %v3072_v59  ;;  %v2928_v5 = vld [vmem:[#allocation3 + $0x488] sm:$0xf]  ;;  %v3605_v21 = vld [vmem:[#allocation3 + $0x474] sm:$0xf0]  ;;  %v3463_v63 = vld [vmem:[#allocation3 + $0xc] sm:$0xf] }
  0x7b   :  { %1418 = vmatpush.bf16.msrb.mxu0 %v2433_v26  ;;  %1431 = vmatpush.bf16.msrb.mxu1 %v2561_v27  ;;  %v2736_v26 = vld [vmem:[#allocation3 + $0x308] sm:$0xf]  ;;  %v3561_v27 = vld [vmem:[#allocation3 + $0x314] sm:$0xf0] }
  0x7c   :  { %1444 = vmatpush.bf16.msrb.mxu2 %v2689_v28  ;;  %v2976_v28 = vld [vmem:[#allocation3 + $0x4e8] sm:$0xf]  ;;  %v3637_v24 = vld [vmem:[#allocation3 + $0x574] sm:$0xf0] }
  0x7d   :  { %1457 = vmatpush.bf16.msrb.mxu3 %v2817_v33  ;;  %v3653_v33 = vld [vmem:[#allocation3 + $0x5f4] sm:$0xf0]  ;;  %v3056_v7 = vld [vmem:[#allocation3 + $0x588] sm:$0xf] }
  0x7e   :  { %v3105_v43 = vor.u32 %v3653_v33, %v3104_v30  ;;  %v2912_v20 = vld [vmem:[#allocation3 + $0x468] sm:$0xf]  ;;  %v3601_v36 = vld [vmem:[#allocation3 + $0x454] sm:$0xf0] }
  0x7f   :  { %1419 = vmatpush.bf16.msrb.mxu0 %v2417_v40  ;;  %1432 = vmatpush.bf16.msrb.mxu1 %v2545_v41  ;;  %v2594_v40 = vld [vmem:[#allocation3 + $0x1f8] sm:$0xf0]  ;;  %v2737_v41 = vor.u32 %v3561_v27, %v2736_v26  ;;  %v3040_v22 = vld [vmem:[#allocation3 + $0x568] sm:$0xf]  ;;  %v3475_v26 = vld [vmem:[#allocation3 + $0x6c] sm:$0xf]  ;;  %v2913_v30 = vor.u32 %v3605_v21, %v2912_v20 }
  0x80   :  { %1445 = vmatpush.bf16.msrb.mxu2 %v2673_v42  ;;  %v2977_v42 = vor.u32 %v3621_v29, %v2976_v28  ;;  %v2597_v48 = vor.u32 %v3523_v39, %v2594_v40  ;;  %v2402_v27 = vld [vmem:[#allocation3 + $0x78] sm:$0xf0]  ;;  %v3507_v28 = vld [vmem:[#allocation3 + $0x16c] sm:$0xf]  ;;  %v2896_v34 = vld [vmem:[#allocation3 + $0x448] sm:$0xf] }
  0x81   :  { %1458 = vmatpush.bf16.msrb.mxu3 %v2801_v46  ;;  %v3617_v46 = vld [vmem:[#allocation3 + $0x4d4] sm:$0xf0]  ;;  %v2530_v29 = vld [vmem:[#allocation3 + $0x178] sm:$0xf0]  ;;  %v2405_v33 = vor.u32 %v3475_v26, %v2402_v27  ;;  %v3471_v40 = vld [vmem:[#allocation3 + $0x4c] sm:$0xf] }
  0x82   :  { %v3633_v39 = vld [vmem:[#allocation3 + $0x554] sm:$0xf0]  ;;  %v2880_v47 = vld [vmem:[#allocation3 + $0x428] sm:$0xf]  ;;  %v2834_v27 = vld [vmem:[#allocation3 + $0x3d8] sm:$0xf0] }
  0x83   :  { %1420 = vmatpush.bf16.msrb.mxu0 %v2401_v52  ;;  %1433 = vmatpush.bf16.msrb.mxu1 %v2529_v53  ;;  %v3519_v52 = vld [vmem:[#allocation3 + $0x1cc] sm:$0xf]  ;;  %v2578_v53 = vld [vmem:[#allocation3 + $0x1d8] sm:$0xf0]  ;;  %v3008_v49 = vld [vmem:[#allocation3 + $0x528] sm:$0xf] }
  0x84   :  { %1446 = vmatpush.bf16.msrb.mxu2 %v2657_v54  ;;  %v2961_v54 = vor.u32 %v3617_v46, %v2960_v45  ;;  %v2581_v60 = vor.u32 %v3519_v52, %v2578_v53  ;;  %v3629_v51 = vld [vmem:[#allocation3 + $0x534] sm:$0xf0]  ;;  %v3467_v52 = vld [vmem:[#allocation3 + $0x2c] sm:$0xf]  ;;  %v2370_v53 = vld [vmem:[#allocation3 + $0x38] sm:$0xf0] }
  0x85   :  { %1459 = vmatpush.bf16.msrb.mxu3 %v2785_v58  ;;  %v3613_v58 = vld [vmem:[#allocation3 + $0x4b4] sm:$0xf0]  ;;  %v3009_v59 = vor.u32 %v3629_v51, %v3008_v49  ;;  %v2992_v61 = vld [vmem:[#allocation3 + $0x508] sm:$0xf]  ;;  %v3543_v49 = vld [vmem:[#allocation3 + $0x28c] sm:$0xf] }
  0x86   :  { %v3625_v62 = vld [vmem:[#allocation3 + $0x514] sm:$0xf0]  ;;  %v3575_v51 = vld [vmem:[#allocation3 + $0x38c] sm:$0xf] }
  0x87   :  { %1421 = vmatpush.bf16.msrb.mxu0 %v2385_v0  ;;  %1434 = vmatpush.bf16.msrb.mxu1 %v2513_v1  ;;  %v3515_v0 = vld [vmem:[#allocation3 + $0x1ac] sm:$0xf]  ;;  %v2562_v1 = vld [vmem:[#allocation3 + $0x1b8] sm:$0xf0] }
  0x88   :  { %1447 = vmatpush.bf16.msrb.mxu2 %v2641_v2  ;;  %v2945_v2 = vor.u32 %v3613_v58, %v2944_v57  ;;  %v2565_v10 = vor.u32 %v3515_v0, %v2562_v1  ;;  %v2864_v57 = vld [vmem:[#allocation3 + $0x408] sm:$0xf]  ;;  %v3593_v58 = vld [vmem:[#allocation3 + $0x414] sm:$0xf0]  ;;  %v2354_v1 = vld [vmem:[#allocation3 + $0x18] sm:$0xf0] }
  0x89   :  { %1460 = vmatpush.bf16.msrb.mxu3 %v2769_v6  ;;  %v3609_v6 = vld [vmem:[#allocation3 + $0x494] sm:$0xf0] }
  0x8a   :  { %v2929_v17 = vor.u32 %v3609_v6, %v2928_v5  ;;  %v2722_v5 = vld [vmem:[#allocation3 + $0x2f8] sm:$0xf0]  ;;  %v3587_v6 = vld [vmem:[#allocation3 + $0x3ec] sm:$0xf] }
  0x8b   :  { %1422 = vmatpush.bf16.msrb.mxu0 %v2369_v14  ;;  %1435 = vmatpush.bf16.msrb.mxu1 %v2497_v18  ;;  %v3511_v14 = vld [vmem:[#allocation3 + $0x18c] sm:$0xf]  ;;  %v3057_v18 = vor.u32 %v3641_v11, %v3056_v7  ;;  %v2865_v7 = vor.u32 %v3593_v58, %v2864_v57 }
  0x8c   :  { %1448 = vmatpush.bf16.msrb.mxu2 %v2625_v19  ;;  %v2421_v19 = vor.u32 %v3479_v12, %v2418_v13  ;;  %v3619_v11 = vld [vmem:[#allocation3 + $0x4ec] sm:$0xf]  ;;  %v2978_v12 = vld [vmem:[#allocation3 + $0x4f8] sm:$0xf0]  ;;  %v2993_v13 = vor.u32 %v3625_v62, %v2992_v61 }
  0x8d   :  { %1461 = vmatpush.bf16.msrb.mxu3 %v2753_v23  ;;  %v2549_v23 = vor.u32 %v3511_v14, %v2546_v16  ;;  %v2357_v14 = vor.u32 %v3463_v63, %v2354_v1  ;;  %v3651_v16 = vld [vmem:[#allocation3 + $0x5ec] sm:$0xf]  ;;  %v2981_v21 = vor.u32 %v3619_v11, %v2978_v12  ;;  %v2786_v63 = vld [vmem:[#allocation3 + $0x378] sm:$0xf0] }
  0x8e   :  { %v3571_v61 = vld [vmem:[#allocation3 + $0x36c] sm:$0xf]  ;;  %v2914_v1 = vld [vmem:[#allocation3 + $0x478] sm:$0xf0] }
  0x8f   :  { %1423 = vmatpush.bf16.msrb.mxu0 %v2353_v31  ;;  %1436 = vmatpush.bf16.msrb.mxu1 %v2481_v37  ;;  %v3041_v31 = vor.u32 %v3637_v24, %v3040_v22  ;;  %v3024_v37 = vld [vmem:[#allocation3 + $0x548] sm:$0xf]  ;;  %v3551_v22 = vld [vmem:[#allocation3 + $0x2cc] sm:$0xf]  ;;  %v2642_v11 = vld [vmem:[#allocation3 + $0x258] sm:$0xf0] }
  0x90   :  { %1449 = vmatpush.bf16.msrb.mxu2 %v2609_v38  ;;  %v2533_v38 = vor.u32 %v3507_v28, %v2530_v29  ;;  %v3025_v45 = vor.u32 %v3633_v39, %v3024_v37  ;;  %v3583_v24 = vld [vmem:[#allocation3 + $0x3cc] sm:$0xf]  ;;  %v2962_v29 = vld [vmem:[#allocation3 + $0x4d8] sm:$0xf0] }
  0x91   :  { %1462 = vmatpush.bf16.msrb.mxu3 %v2737_v41  ;;  %v2386_v41 = vld [vmem:[#allocation3 + $0x58] sm:$0xf0]  ;;  %v3615_v28 = vld [vmem:[#allocation3 + $0x4cc] sm:$0xf] }
  0x92   :  { %1424 = vmatmul.bf16.vlgmr.msrb.gmra.mxu0 %v3918_v9  ;;  %1437 = vmatmul.bf16.vlgmr.msrb.gmra.mxu1 %v3931_v25  ;;  %v2389_v46 = vor.u32 %v3471_v40, %v2386_v41  ;;  %v3547_v37 = vld [vmem:[#allocation3 + $0x2ac] sm:$0xf]  ;;  %v2818_v41 = vld [vmem:[#allocation3 + $0x3b8] sm:$0xf0] }
  0x93   :  { %1468 = vmatpush.bf16.msra.mxu0 %v2977_v42  ;;  %1481 = vmatpush.bf16.msra.mxu1 %v3105_v43  ;;  %v3503_v42 = vld [vmem:[#allocation3 + $0x14c] sm:$0xf]  ;;  %v2514_v43 = vld [vmem:[#allocation3 + $0x158] sm:$0xf0] }
  0x94   :  { %1494 = vmatpush.bf16.msra.mxu2 %v2469_v44  ;;  %1463 = vmatmul.bf16.vlgmr.msrb.gmra.mxu3 %v3923_v15  ;;  %v2897_v44 = vor.u32 %v3601_v36, %v2896_v34  ;;  %v2517_v50 = vor.u32 %v3503_v42, %v2514_v43  ;;  %v2837_v34 = vor.u32 %v3583_v24, %v2834_v27  ;;  %v3579_v39 = vld [vmem:[#allocation3 + $0x3ac] sm:$0xf]  ;;  %v2946_v43 = vld [vmem:[#allocation3 + $0x4b8] sm:$0xf0] }
  0x95   :  { %1507 = vmatpush.bf16.msra.mxu3 %v2597_v48  ;;  %1450 = vmatmul.bf16.vlgmr.msrb.gmra.mxu2 %v3916_v8  ;;  %v3597_v48 = vld [vmem:[#allocation3 + $0x434] sm:$0xf0]  ;;  %v2965_v36 = vor.u32 %v3615_v28, %v2962_v29  ;;  %v3611_v42 = vld [vmem:[#allocation3 + $0x4ac] sm:$0xf]  ;;  %v2754_v29 = vld [vmem:[#allocation3 + $0x338] sm:$0xf0] }
  0x96   :  { %v3567_v12 = vld [vmem:[#allocation3 + $0x34c] sm:$0xf] }
  0x97   :  { %1469 = vmatpush.bf16.msra.mxu0 %v2961_v54  ;;  %1482 = vmatpush.bf16.msra.mxu1 %v3089_v55  ;;  %v3499_v54 = vld [vmem:[#allocation3 + $0x12c] sm:$0xf]  ;;  %v2498_v55 = vld [vmem:[#allocation3 + $0x138] sm:$0xf0] }
  0x98   :  { %1495 = vmatpush.bf16.msra.mxu2 %v2453_v56  ;;  %v2881_v56 = vor.u32 %v3597_v48, %v2880_v47  ;;  %v2501_v0 = vor.u32 %v3499_v54, %v2498_v55  ;;  %v2821_v47 = vor.u32 %v3579_v39, %v2818_v41  ;;  %v2949_v48 = vor.u32 %v3611_v42, %v2946_v43  ;;  %v3607_v54 = vld [vmem:[#allocation3 + $0x48c] sm:$0xf]  ;;  %v2930_v55 = vld [vmem:[#allocation3 + $0x498] sm:$0xf0] }
  0x99   :  { %1508 = vmatpush.bf16.msra.mxu3 %v2581_v60  ;;  %v2373_v60 = vor.u32 %v3467_v52, %v2370_v53  ;;  %v2802_v53 = vld [vmem:[#allocation3 + $0x398] sm:$0xf0]  ;;  %v3531_v24 = vld [vmem:[#allocation3 + $0x22c] sm:$0xf] }
  0x9a   :  { %v2805_v58 = vor.u32 %v3575_v51, %v2802_v53  ;;  %v3563_v27 = vld [vmem:[#allocation3 + $0x32c] sm:$0xf]  ;;  %v2610_v43 = vld [vmem:[#allocation3 + $0x218] sm:$0xf0]  ;;  %v3168_v51 = vld [vmem:[#allocation5 + $0x70] sm:$0xf] }
  0x9b   :  { %1470 = vmatpush.bf16.msra.mxu0 %v2945_v2  ;;  %1483 = vmatpush.bf16.msra.mxu1 %v3073_v3  ;;  %v3495_v2 = vld [vmem:[#allocation3 + $0x10c] sm:$0xf]  ;;  %v2482_v3 = vld [vmem:[#allocation3 + $0x118] sm:$0xf0]  ;;  %v2757_v41 = vor.u32 %v3563_v27, %v2754_v29  ;;  %v3677_v27 = vld [vmem:[#allocation5 + $0xb4] sm:$0xf0] }
  0x9c   :  { %1496 = vmatpush.bf16.msra.mxu2 %v2437_v4  ;;  %v3555_v4 = vld [vmem:[#allocation3 + $0x2ec] sm:$0xf]  ;;  %v3128_v29 = vld [vmem:[#allocation5 + $0x20] sm:$0xf] }
  0x9d   :  { %1509 = vmatpush.bf16.msra.mxu3 %v2565_v10  ;;  %v2850_v10 = vld [vmem:[#allocation3 + $0x3f8] sm:$0xf0]  ;;  %v3527_v39 = vld [vmem:[#allocation3 + $0x20c] sm:$0xf] }
  0x9e   :  { %v2853_v20 = vor.u32 %v3587_v6, %v2850_v10  ;;  %v2789_v6 = vor.u32 %v3571_v61, %v2786_v63  ;;  %v3535_v10 = vld [vmem:[#allocation3 + $0x24c] sm:$0xf]  ;;  %v2613_v53 = vor.u32 %v3527_v39, %v2610_v43  ;;  %v3667_v63 = vld [vmem:[#allocation5 + $0x64] sm:$0xf0]  ;;  %v3120_v43 = vld [vmem:[#allocation5 + $0x10] sm:$0xf] }
  0x9f   :  { %1471 = vmatpush.bf16.msra.mxu0 %v2929_v17  ;;  %1484 = vmatpush.bf16.msra.mxu1 %v3057_v18  ;;  %v3106_v17 = vld [vmem:[#allocation3 + $0x5f8] sm:$0xf0]  ;;  %v2485_v18 = vor.u32 %v3495_v2, %v2482_v3  ;;  %v3635_v2 = vld [vmem:[#allocation3 + $0x56c] sm:$0xf] }
  0xa0   :  { %1497 = vmatpush.bf16.msra.mxu2 %v2421_v19  ;;  %v2725_v19 = vor.u32 %v3555_v4, %v2722_v5  ;;  %v3109_v26 = vor.u32 %v3651_v16, %v3106_v17  ;;  %v3042_v3 = vld [vmem:[#allocation3 + $0x578] sm:$0xf0]  ;;  %v3599_v16 = vld [vmem:[#allocation3 + $0x44c] sm:$0xf] }
  0xa1   :  { %1510 = vmatpush.bf16.msra.mxu3 %v2549_v23  ;;  %v2706_v23 = vld [vmem:[#allocation3 + $0x2d8] sm:$0xf0] }
  0xa2   :  { %v2898_v17 = vld [vmem:[#allocation3 + $0x458] sm:$0xf0] }
  0xa3   :  { %1472 = vmatpush.bf16.msra.mxu0 %v2913_v30  ;;  %1485 = vmatpush.bf16.msra.mxu1 %v3041_v31  ;;  %v3647_v30 = vld [vmem:[#allocation3 + $0x5cc] sm:$0xf]  ;;  %v3090_v31 = vld [vmem:[#allocation3 + $0x5d8] sm:$0xf0] }
  0xa4   :  { %1498 = vmatpush.bf16.msra.mxu2 %v2405_v33  ;;  %v2709_v33 = vor.u32 %v3551_v22, %v2706_v23  ;;  %v3093_v40 = vor.u32 %v3647_v30, %v3090_v31  ;;  %v2901_v23 = vor.u32 %v3599_v16, %v2898_v17  ;;  %v3595_v30 = vld [vmem:[#allocation3 + $0x42c] sm:$0xf]  ;;  %v2882_v31 = vld [vmem:[#allocation3 + $0x438] sm:$0xf0]  ;;  %v3144_v17 = vld [vmem:[#allocation5 + $0x40] sm:$0xf] }
  0xa5   :  { %1511 = vmatpush.bf16.msra.mxu3 %v2533_v38  ;;  %v2690_v38 = vld [vmem:[#allocation3 + $0x2b8] sm:$0xf0]  ;;  %v2885_v42 = vor.u32 %v3595_v30, %v2882_v31  ;;  %v3659_v30 = vld [vmem:[#allocation5 + $0x24] sm:$0xf0] }
  0xa7   :  { %1473 = vmatpush.bf16.msra.mxu0 %v2897_v44  ;;  %1486 = vmatpush.bf16.msra.mxu1 %v3025_v45  ;;  %v3643_v44 = vld [vmem:[#allocation3 + $0x5ac] sm:$0xf]  ;;  %v3074_v45 = vld [vmem:[#allocation3 + $0x5b8] sm:$0xf0] }
  0xa8   :  { %1499 = vmatpush.bf16.msra.mxu2 %v2389_v46  ;;  %v2693_v46 = vor.u32 %v3547_v37, %v2690_v38  ;;  %v3077_v52 = vor.u32 %v3643_v44, %v3074_v45  ;;  %v3559_v44 = vld [vmem:[#allocation3 + $0x30c] sm:$0xf]  ;;  %v2738_v45 = vld [vmem:[#allocation3 + $0x318] sm:$0xf0] }
  0xa9   :  { %1512 = vmatpush.bf16.msra.mxu3 %v2517_v50  ;;  %v2674_v50 = vld [vmem:[#allocation3 + $0x298] sm:$0xf0] }
  0xaa   :  { %v2677_v57 = vor.u32 %v3543_v49, %v2674_v50  ;;  %v3623_v49 = vld [vmem:[#allocation3 + $0x50c] sm:$0xf]  ;;  %v2994_v50 = vld [vmem:[#allocation3 + $0x518] sm:$0xf0] }
  0xab   :  { %1474 = vmatpush.bf16.msra.mxu0 %v2881_v56  ;;  %1487 = vmatpush.bf16.msra.mxu1 %v3009_v59  ;;  %v3639_v56 = vld [vmem:[#allocation3 + $0x58c] sm:$0xf] }
  0xac   :  { %1500 = vmatpush.bf16.msra.mxu2 %v2373_v60  ;;  %v3539_v59 = vld [vmem:[#allocation3 + $0x26c] sm:$0xf]  ;;  %v2658_v60 = vld [vmem:[#allocation3 + $0x278] sm:$0xf0] }
  0xad   :  { %1513 = vmatpush.bf16.msra.mxu3 %v2501_v0  ;;  %v3603_v0 = vld [vmem:[#allocation3 + $0x46c] sm:$0xf]  ;;  %v2661_v4 = vor.u32 %v3539_v59, %v2658_v60 }
  0xaf   :  { %1475 = vmatpush.bf16.msra.mxu0 %v2865_v7  ;;  %1488 = vmatpush.bf16.msra.mxu1 %v2993_v13  ;;  %v2917_v7 = vor.u32 %v3603_v0, %v2914_v1  ;;  %v3045_v13 = vor.u32 %v3635_v2, %v3042_v3  ;;  %v3224_v2 = vld [vmem:[#allocation5 + $0xe0] sm:$0xf]  ;;  %v3683_v3 = vld [vmem:[#allocation5 + $0xe4] sm:$0xf0] }
  0xb0   :  { %1501 = vmatpush.bf16.msra.mxu2 %v2357_v14  ;;  %v2770_v14 = vld [vmem:[#allocation3 + $0x358] sm:$0xf0] }
  0xb1   :  { %1514 = vmatpush.bf16.msra.mxu3 %v2485_v18  ;;  %v3631_v18 = vld [vmem:[#allocation3 + $0x54c] sm:$0xf]  ;;  %v2773_v22 = vor.u32 %v3567_v12, %v2770_v14  ;;  %v3216_v12 = vld [vmem:[#allocation5 + $0xd0] sm:$0xf] }
  0xb2   :  { %1476 = vmatmul.bf16.vlgmr.msra.gmra.mxu0 %v3940_v32  ;;  %1489 = vmatmul.bf16.vlgmr.msra.gmra.mxu1 %v3942_v35 }
  0xb3   :  { %1520 = vmatpush.bf16.msrb.mxu0 %v2725_v19  ;;  %1533 = vmatpush.bf16.msrb.mxu1 %v2853_v20  ;;  %v3026_v19 = vld [vmem:[#allocation3 + $0x558] sm:$0xf0]  ;;  %v2645_v20 = vor.u32 %v3535_v10, %v2642_v11  ;;  %v3665_v10 = vld [vmem:[#allocation5 + $0x54] sm:$0xf0]  ;;  %v3225_v11 = vor.u32 %v3683_v3, %v3224_v2  ;;  %v3682_v3 = vld [vmem:[#allocation5 + $0xe4] sm:$0xf] }
  0xb4   :  { %1546 = vmatpush.bf16.msrb.mxu2 %v2981_v21  ;;  %1515 = vmatmul.bf16.vlgmr.msra.gmra.mxu3 %v3931_v25  ;;  %v2933_v25 = vor.u32 %v3607_v54, %v2930_v55  ;;  %v3962_v21 = vpop.f32.mrf.mxu1  ;;  %v3029_v28 = vor.u32 %v3631_v18, %v3026_v19  ;;  %v3971_v54 = vld [vmem:[%s4036_s2] sm:$0xf]  ;;  %v3232_v55 = vld [vmem:[#allocation5 + $0xf0] sm:$0xf]  ;;  %v3679_v19 = vld [vmem:[#allocation5 + $0xc4] sm:$0xf0] }
  0xb5   :  { %1559 = vmatpush.bf16.msrb.mxu3 %v3109_v26  ;;  %1502 = vmatmul.bf16.vlgmr.msra.gmra.mxu2 %v3918_v9  ;;  %v3058_v9 = vld [vmem:[#allocation3 + $0x598] sm:$0xf0]  ;;  %v292_v61 = vperm.slane %v3971_v54, 0  ;;  %v3208_v18 = vld [vmem:[#allocation5 + $0xc0] sm:$0xf]  ;;  %v293_v2 = vperm.slane %v3971_v54, 1 }
  0xb6   :  { %v3061_v62 = vor.u32 %v3639_v56, %v3058_v9  ;;  %v2626_v26 = vld [vmem:[#allocation3 + $0x238] sm:$0xf0]  ;;  %v3685_v56 = vld [vmem:[#allocation5 + $0xf4] sm:$0xf0] }
  0xb7   :  { %1521 = vmatpush.bf16.msrb.mxu0 %v2709_v33  ;;  %1534 = vmatpush.bf16.msrb.mxu1 %v2837_v34  ;;  %v3960_v5 = vpop.f32.mrf.mxu0  ;;  %v3627_v34 = vld [vmem:[#allocation3 + $0x52c] sm:$0xf]  ;;  %v3966_v37 = vpop.f32.mrf.mxu3  ;;  %v2629_v38 = vor.u32 %v3531_v24, %v2626_v26  ;;  %v3233_v0 = vor.u32 %v3685_v56, %v3232_v55  ;;  %v3661_v24 = vld [vmem:[#allocation5 + $0x34] sm:$0xf0]  ;;  %v3200_v26 = vld [vmem:[#allocation5 + $0xb0] sm:$0xf] }
  0xb8   :  { %1547 = vmatpush.bf16.msrb.mxu2 %v2965_v36  ;;  %v3010_v36 = vld [vmem:[#allocation3 + $0x538] sm:$0xf0]  ;;  %v3201_v31 = vor.u32 %v3677_v27, %v3200_v26  ;;  %v3176_v56 = vld [vmem:[#allocation5 + $0x80] sm:$0xf]  ;;  %v3678_v27 = vld [vmem:[#allocation5 + $0xc4] sm:$0xf] }
  0xb9   :  { %1560 = vmatpush.bf16.msrb.mxu3 %v3093_v40 }
  0xbb   :  { %1522 = vmatpush.bf16.msrb.mxu0 %v2693_v46  ;;  %1535 = vmatpush.bf16.msrb.mxu1 %v2821_v47  ;;  %v3013_v46 = vor.u32 %v3627_v34, %v3010_v36  ;;  %v3591_v47 = vld [vmem:[#allocation3 + $0x40c] sm:$0xf]  ;;  %v3192_v36 = vld [vmem:[#allocation5 + $0xa0] sm:$0xf] }
  0xbc   :  { %1548 = vmatpush.bf16.msrb.mxu2 %v2949_v48  ;;  %v3964_v33 = vpop.f32.mrf.mxu2  ;;  %v2866_v48 = vld [vmem:[#allocation3 + $0x418] sm:$0xf0]  ;;  %v1284_v9 = vpop.f32.mrf.mxu1 }
  0xbd   :  { %1561 = vmatpush.bf16.msrb.mxu3 %v3077_v52  ;;  %v3669_v52 = vld [vmem:[#allocation5 + $0x74] sm:$0xf0]  ;;  %v3671_v9 = vld [vmem:[#allocation5 + $0x84] sm:$0xf0] }
  0xbe   :  { %v3169_v59 = vor.u32 %v3669_v52, %v3168_v51  ;;  %v3668_v51 = vld [vmem:[#allocation5 + $0x74] sm:$0xf] }
  0xbf   :  { %1523 = vmatpush.bf16.msrb.mxu0 %v2677_v57  ;;  %1536 = vmatpush.bf16.msrb.mxu1 %v2805_v58  ;;  %v1271_v40 = vpop.f32.mrf.mxu0  ;;  %v2741_v57 = vor.u32 %v3559_v44, %v2738_v45  ;;  %v2869_v58 = vor.u32 %v3591_v47, %v2866_v48  ;;  %v1310_v1 = vpop.f32.mrf.mxu3  ;;  %v3657_v44 = vld [vmem:[#allocation5 + $0x14] sm:$0xf0] }
  0xc0   :  { %1549 = vmatpush.bf16.msrb.mxu2 %v2933_v25  ;;  %v2997_v25 = vor.u32 %v3623_v49, %v2994_v50  ;;  %v3129_v40 = vor.u32 %v3659_v30, %v3128_v29  ;;  %v3121_v47 = vor.u32 %v3657_v44, %v3120_v43  ;;  %v3112_v49 = vld [vmem:[#allocation5] sm:$0xf]  ;;  %v3655_v50 = vld [vmem:[#allocation5 + $0x4] sm:$0xf0]  ;;  %v3202_v43 = vld [vmem:[#allocation5 + $0xb8] sm:$0xf0] }
  0xc1   :  { %1562 = vmatpush.bf16.msrb.mxu3 %v3061_v62  ;;  %v3160_v62 = vld [vmem:[#allocation5 + $0x60] sm:$0xf]  ;;  %v3695_v30 = vld [vmem:[#allocation5 + $0x144] sm:$0xf0] }
  0xc2   :  { %v3272_v29 = vld [vmem:[#allocation5 + $0x140] sm:$0xf] }
  0xc3   :  { %1524 = vmatpush.bf16.msrb.mxu0 %v2661_v4  ;;  %1537 = vmatpush.bf16.msrb.mxu1 %v2789_v6  ;;  %v3161_v4 = vor.u32 %v3667_v63, %v3160_v62  ;;  %v1270_v6 = vadd.f32 %v3960_v5, %v292_v61  ;;  %v3177_v62 = vor.u32 %v3671_v9, %v3176_v56  ;;  %v3666_v63 = vld [vmem:[#allocation5 + $0x64] sm:$0xf]  ;;  %v3256_v9 = vld [vmem:[#allocation5 + $0x120] sm:$0xf] }
  0xc4   :  { %1550 = vmatpush.bf16.msrb.mxu2 %v2917_v7  ;;  %v1297_v60 = vpop.f32.mrf.mxu2  ;;  %v3152_v7 = vld [vmem:[#allocation5 + $0x50] sm:$0xf]  ;;  %v3273_v44 = vor.u32 %v3695_v30, %v3272_v29  ;;  %v3717_v29 = vld [vmem:[#allocation5 + $0x1f4] sm:$0xf0] }
  0xc5   :  { %1563 = vmatpush.bf16.msrb.mxu3 %v3045_v13  ;;  %v3681_v13 = vld [vmem:[#allocation5 + $0xd4] sm:$0xf0]  ;;  %v3153_v14 = vor.u32 %v3665_v10, %v3152_v7  ;;  %v1283_v16 = vadd.f32 %v3962_v21, %v1270_v6  ;;  %v3296_v6 = vld [vmem:[#allocation5 + $0x170] sm:$0xf] }
  0xc6   :  { %v3217_v5 = vor.u32 %v3681_v13, %v3216_v12  ;;  %v3701_v7 = vld [vmem:[#allocation5 + $0x174] sm:$0xf0]  ;;  %v3288_v13 = vld [vmem:[#allocation5 + $0x160] sm:$0xf] }
  0xc7   :  { %1525 = vmatpush.bf16.msrb.mxu0 %v2645_v20  ;;  %1538 = vmatpush.bf16.msrb.mxu1 %v2773_v22  ;;  %v3297_v12 = vor.u32 %v3701_v7, %v3296_v6  ;;  %v3689_v6 = vld [vmem:[#allocation5 + $0x114] sm:$0xf0] }
  0xc8   :  { %1551 = vmatpush.bf16.msrb.mxu2 %v2901_v23  ;;  %v3136_v23 = vld [vmem:[#allocation5 + $0x30] sm:$0xf] }
  0xc9   :  { %1564 = vmatpush.bf16.msrb.mxu3 %v3029_v28  ;;  %v3137_v21 = vor.u32 %v3661_v24, %v3136_v23  ;;  %v3662_v23 = vld [vmem:[#allocation5 + $0x44] sm:$0xf]  ;;  %v3146_v24 = vld [vmem:[#allocation5 + $0x48] sm:$0xf0] }
  0xcb   :  { %1526 = vmatpush.bf16.msrb.mxu0 %v2629_v38  ;;  %1539 = vmatpush.bf16.msrb.mxu1 %v2757_v41  ;;  %v3675_v38 = vld [vmem:[#allocation5 + $0xa4] sm:$0xf0] }
  0xcc   :  { %1552 = vmatpush.bf16.msrb.mxu2 %v2885_v42  ;;  %v3193_v45 = vor.u32 %v3675_v38, %v3192_v36  ;;  %v3660_v36 = vld [vmem:[#allocation5 + $0x34] sm:$0xf]  ;;  %v3138_v38 = vld [vmem:[#allocation5 + $0x38] sm:$0xf0] }
  0xcd   :  { %1565 = vmatpush.bf16.msrb.mxu3 %v3013_v46  ;;  %v3184_v46 = vld [vmem:[#allocation5 + $0x90] sm:$0xf] }
  0xcf   :  { %1527 = vmatpush.bf16.msrb.mxu0 %v2613_v53  ;;  %1540 = vmatpush.bf16.msrb.mxu1 %v2741_v57  ;;  %v1321_v20 = vpop.f32.mrf.mxu0  ;;  %v3170_v53 = vld [vmem:[#allocation5 + $0x78] sm:$0xf0] }
  0xd0   :  { %1553 = vmatpush.bf16.msrb.mxu2 %v2869_v58  ;;  %v3684_v58 = vld [vmem:[#allocation5 + $0xf4] sm:$0xf]  ;;  %v3173_v61 = vor.u32 %v3668_v51, %v3170_v53  ;;  %v3674_v51 = vld [vmem:[#allocation5 + $0xa4] sm:$0xf] }
  0xd1   :  { %1566 = vmatpush.bf16.msrb.mxu3 %v2997_v25  ;;  %v3234_v25 = vld [vmem:[#allocation5 + $0xf8] sm:$0xf0] }
  0xd2   :  { %1528 = vmatmul.bf16.vlgmr.msrb.gmra.mxu0 %v3916_v8  ;;  %1541 = vmatmul.bf16.vlgmr.msrb.gmra.mxu1 %v3923_v15  ;;  %v3663_v8 = vld [vmem:[#allocation5 + $0x44] sm:$0xf0]  ;;  %v1334_v15 = vpop.f32.mrf.mxu1  ;;  %v3237_v1 = vor.u32 %v3684_v58, %v3234_v25 }
  0xd3   :  { %1970 = vmatpush.bf16.msra.mxu0 %v3169_v59  ;;  %1983 = vmatpush.bf16.msra.mxu1 %v3233_v0  ;;  %v3145_v22 = vor.u32 %v3663_v8, %v3144_v17  ;;  %v3113_v59 = vor.u32 %v3655_v50, %v3112_v49  ;;  %v3162_v0 = vld [vmem:[#allocation5 + $0x68] sm:$0xf0]  ;;  %v3154_v17 = vld [vmem:[#allocation5 + $0x58] sm:$0xf0] }
  0xd4   :  { %1554 = vmatmul.bf16.vlgmr.msrb.gmra.mxu2 %v3940_v32  ;;  %1567 = vmatmul.bf16.vlgmr.msrb.gmra.mxu3 %v3942_v35  ;;  %v1296_v32 = vadd.f32 %v3964_v33, %v1283_v16  ;;  %v3209_v35 = vor.u32 %v3679_v19, %v3208_v18  ;;  %v3664_v16 = vld [vmem:[#allocation5 + $0x54] sm:$0xf]  ;;  %v3218_v19 = vld [vmem:[#allocation5 + $0xd8] sm:$0xf0] }
  0xd5   :  { %v3680_v18 = vld [vmem:[#allocation5 + $0xd4] sm:$0xf]  ;;  %1996 = vmatpush.bf16.msra.mxu2 %v3297_v12  ;;  %v3654_v12 = vld [vmem:[#allocation5 + $0x4] sm:$0xf] }
  0xd6   :  { %v1309_v28 = vadd.f32 %v3966_v37, %v1296_v32  ;;  %v3673_v37 = vld [vmem:[#allocation5 + $0x94] sm:$0xf0]  ;;  %v3157_v32 = vor.u32 %v3664_v16, %v3154_v17  ;;  %v3670_v16 = vld [vmem:[#allocation5 + $0x84] sm:$0xf]  ;;  %v3178_v17 = vld [vmem:[#allocation5 + $0x88] sm:$0xf0] }
  0xd7   :  { %1971 = vmatpush.bf16.msra.mxu0 %v3161_v4  ;;  %1984 = vmatpush.bf16.msra.mxu1 %v3225_v11  ;;  %v3982_v39 = vpop.f32.mrf.mxu3  ;;  %v1323_v33 = vpop.f32.mrf.mxu0  ;;  %v3185_v52 = vor.u32 %v3673_v37, %v3184_v46  ;;  %v3226_v4 = vld [vmem:[#allocation5 + $0xe8] sm:$0xf0]  ;;  %v3165_v11 = vor.u32 %v3666_v63, %v3162_v0  ;;  %v3141_v37 = vor.u32 %v3660_v36, %v3138_v38  ;;  %v3672_v63 = vld [vmem:[#allocation5 + $0x94] sm:$0xf]  ;;  %v3186_v0 = vld [vmem:[#allocation5 + $0x98] sm:$0xf0] }
  0xd8   :  { %v1347_v34 = vpop.f32.mrf.mxu2  ;;  %v1322_v42 = vadd.f32 %v1321_v20, %v1309_v28  ;;  %v3229_v8 = vor.u32 %v3682_v3, %v3226_v4  ;;  %v3248_v4 = vld [vmem:[#allocation5 + $0x110] sm:$0xf] }
  0xda   :  { %v1336_v41 = vpop.f32.mrf.mxu1  ;;  %v1335_v48 = vadd.f32 %v1334_v15, %v1322_v42  ;;  %v3697_v15 = vld [vmem:[#allocation5 + $0x154] sm:$0xf0]  ;;  %v3676_v42 = vld [vmem:[#allocation5 + $0xb4] sm:$0xf] }
  0xdb   :  { %1972 = vmatpush.bf16.msra.mxu0 %v3153_v14  ;;  %1985 = vmatpush.bf16.msra.mxu1 %v3217_v5  ;;  %v3699_v14 = vld [vmem:[#allocation5 + $0x164] sm:$0xf0]  ;;  %v1348_v5 = vadd.f32 %v1347_v34, %v293_v2  ;;  %v3205_v49 = vor.u32 %v3676_v42, %v3202_v43  ;;  %v3694_v43 = vld [vmem:[#allocation5 + $0x144] sm:$0xf] }
  0xdc   :  { %v1572_v60 = vmax.f32 %v1335_v48, 0.0  ;;  %v3289_v20 = vor.u32 %v3699_v14, %v3288_v13  ;;  %v3130_v48 = vld [vmem:[#allocation5 + $0x28] sm:$0xf0]  ;;  %v3189_v14 = vor.u32 %v3672_v63, %v3186_v0  ;;  %v3320_v0 = vld [vmem:[#allocation5 + $0x1a0] sm:$0xf] }
  0xdd   :  { %v1361_v26 = vadd.f32 %v3982_v39, %v1348_v5  ;;  %v3264_v39 = vld [vmem:[#allocation5 + $0x130] sm:$0xf]  ;;  %v3114_v13 = vld [vmem:[#allocation5 + $0x8] sm:$0xf0]  ;;  %v3249_v5 = vor.u32 %v3689_v6, %v3248_v4  ;;  %v3686_v6 = vld [vmem:[#allocation5 + $0x104] sm:$0xf] }
  0xde   :  { %v3985_v10 = vpack.c.bf16 %v1572_v60, %v1572_v60  ;;  %1997 = vmatpush.bf16.msra.mxu2 %v3289_v20  ;;  %v3122_v60 = vld [vmem:[#allocation5 + $0x18] sm:$0xf0]  ;;  %v3687_v20 = vld [vmem:[#allocation5 + $0x104] sm:$0xf0] }
  0xdf   :  { %1973 = vmatpush.bf16.msra.mxu0 %v3145_v22  ;;  %1986 = vmatpush.bf16.msra.mxu1 %v3209_v35  ;;  %v1362_v57 = vpop.f32.mrf.mxu3  ;;  %v3280_v22 = vld [vmem:[#allocation5 + $0x150] sm:$0xf]  ;;  %v3221_v35 = vor.u32 %v3680_v18, %v3218_v19  ;;  %v3240_v19 = vld [vmem:[#allocation5 + $0x100] sm:$0xf] }
  0xe0   :  { %v1349_v55 = vpop.f32.mrf.mxu2  ;;  %v3281_v28 = vor.u32 %v3697_v15, %v3280_v22  ;;  %v3691_v57 = vld [vmem:[#allocation5 + $0x124] sm:$0xf0]  ;;  %v3117_v22 = vor.u32 %v3654_v12, %v3114_v13  ;;  %v3700_v15 = vld [vmem:[#allocation5 + $0x174] sm:$0xf]  ;;  %v3312_v13 = vld [vmem:[#allocation5 + $0x190] sm:$0xf] }
  0xe1   :  { %v3257_v2 = vor.u32 %v3691_v57, %v3256_v9  ;;  %v3258_v57 = vld [vmem:[#allocation5 + $0x128] sm:$0xf0] }
  0xe2   :  { %1998 = vmatpush.bf16.msra.mxu2 %v3281_v28  ;;  %v3360_v28 = vld [vmem:[#allocation5 + $0x1f0] sm:$0xf] }
  0xe3   :  { %1974 = vmatpush.bf16.msra.mxu0 %v3137_v21  ;;  %1987 = vmatpush.bf16.msra.mxu1 %v3201_v31  ;;  %v3210_v21 = vld [vmem:[#allocation5 + $0xc8] sm:$0xf0]  ;;  %v3149_v31 = vor.u32 %v3662_v23, %v3146_v24  ;;  %v3181_v23 = vor.u32 %v3670_v16, %v3178_v17  ;;  %v3241_v24 = vor.u32 %v3687_v20, %v3240_v19  ;;  %v3703_v19 = vld [vmem:[#allocation5 + $0x184] sm:$0xf0] }
  0xe4   :  { %v3213_v33 = vor.u32 %v3678_v27, %v3210_v21  ;;  %v3290_v27 = vld [vmem:[#allocation5 + $0x168] sm:$0xf0]  ;;  %v3361_v30 = vor.u32 %v3717_v29, %v3360_v28 }
  0xe6   :  { %1999 = vmatpush.bf16.msra.mxu2 %v3273_v44  ;;  %2009 = vmatpush.bf16.msra.mxu3 %v3361_v30  ;;  %v3274_v44 = vld [vmem:[#allocation5 + $0x148] sm:$0xf0]  ;;  %v3712_v30 = vld [vmem:[#allocation5 + $0x1d4] sm:$0xf] }
  0xe7   :  { %1975 = vmatpush.bf16.msra.mxu0 %v3129_v40  ;;  %1988 = vmatpush.bf16.msra.mxu1 %v3193_v45  ;;  %v3693_v45 = vld [vmem:[#allocation5 + $0x134] sm:$0xf0] }
  0xe8   :  { %v3265_v53 = vor.u32 %v3693_v45, %v3264_v39  ;;  %v3344_v39 = vld [vmem:[#allocation5 + $0x1d0] sm:$0xf]  ;;  %v3713_v45 = vld [vmem:[#allocation5 + $0x1d4] sm:$0xf0] }
  0xea   :  { %2000 = vmatpush.bf16.msra.mxu2 %v3265_v53  ;;  %v3711_v53 = vld [vmem:[#allocation5 + $0x1c4] sm:$0xf0] }
  0xeb   :  { %1976 = vmatpush.bf16.msra.mxu0 %v3121_v47  ;;  %1989 = vmatpush.bf16.msra.mxu1 %v3185_v52  ;;  %v3658_v47 = vld [vmem:[#allocation5 + $0x24] sm:$0xf]  ;;  %v3194_v52 = vld [vmem:[#allocation5 + $0xa8] sm:$0xf0] }
  0xec   :  { %v3133_v58 = vor.u32 %v3658_v47, %v3130_v48  ;;  %v3692_v47 = vld [vmem:[#allocation5 + $0x134] sm:$0xf]  ;;  %v3266_v48 = vld [vmem:[#allocation5 + $0x138] sm:$0xf0] }
  0xee   :  { %2001 = vmatpush.bf16.msra.mxu2 %v3257_v2 }
  0xef   :  { %1977 = vmatpush.bf16.msra.mxu0 %v3113_v59  ;;  %1990 = vmatpush.bf16.msra.mxu1 %v3177_v62  ;;  %v1373_v34 = vpop.f32.mrf.mxu0  ;;  %v1386_v41 = vpop.f32.mrf.mxu1  ;;  %v3656_v59 = vld [vmem:[#allocation5 + $0x14] sm:$0xf] }
  0xf0   :  { %v1374_v40 = vadd.f32 %v1373_v34, %v1361_v26  ;;  %v3125_v7 = vor.u32 %v3656_v59, %v3122_v60  ;;  %v3698_v26 = vld [vmem:[#allocation5 + $0x164] sm:$0xf]  ;;  %v3282_v34 = vld [vmem:[#allocation5 + $0x158] sm:$0xf0]  ;;  %v294_v60 = vperm.slane %v3971_v54, 2 }
  0xf1   :  { %v3293_v21 = vor.u32 %v3698_v26, %v3290_v27  ;;  %v3354_v26 = vld [vmem:[#allocation5 + $0x1e8] sm:$0xf0] }
  0xf2   :  { %1978 = vmatmul.bf16.vlgmr.msra.gmra.mxu0 %v3985_v10  ;;  %v1387_v46 = vadd.f32 %v1386_v41, %v1374_v40  ;;  %2002 = vmatpush.bf16.msra.mxu2 %v3249_v5  ;;  %v3352_v40 = vld [vmem:[#allocation5 + $0x1e0] sm:$0xf]  ;;  %v3715_v41 = vld [vmem:[#allocation5 + $0x1e4] sm:$0xf0] }
  0xf3   :  { %2022 = vmatpush.bf16.msrb.mxu0 %v3173_v61  ;;  %2035 = vmatpush.bf16.msrb.mxu1 %v3237_v1  ;;  %v3197_v61 = vor.u32 %v3674_v51, %v3194_v52  ;;  %v3353_v42 = vor.u32 %v3715_v41, %v3352_v40  ;;  %v3269_v51 = vor.u32 %v3692_v47, %v3266_v48  ;;  %v3336_v52 = vld [vmem:[#allocation5 + $0x1c0] sm:$0xf]  ;;  %v3322_v47 = vld [vmem:[#allocation5 + $0x1a8] sm:$0xf0] }
  0xf4   :  { %v3337_v9 = vor.u32 %v3711_v53, %v3336_v52  ;;  %v3314_v52 = vld [vmem:[#allocation5 + $0x198] sm:$0xf0] }
  0xf5   :  { %2010 = vmatpush.bf16.msra.mxu3 %v3353_v42  ;;  %v3710_v42 = vld [vmem:[#allocation5 + $0x1c4] sm:$0xf] }
  0xf6   :  { %2003 = vmatpush.bf16.msra.mxu2 %v3241_v24 }
  0xf7   :  { %2023 = vmatpush.bf16.msrb.mxu0 %v3165_v11  ;;  %2036 = vmatpush.bf16.msrb.mxu1 %v3229_v8  ;;  %v1412_v56 = vpop.f32.mrf.mxu3  ;;  %v1375_v62 = vpop.f32.mrf.mxu0 }
  0xf8   :  { %v1399_v50 = vpop.f32.mrf.mxu2  ;;  %v1388_v1 = vpop.f32.mrf.mxu1  ;;  %v3250_v62 = vld [vmem:[#allocation5 + $0x118] sm:$0xf0] }
  0xf9   :  { %v1400_v55 = vadd.f32 %v1399_v50, %v1387_v46  ;;  %v3345_v46 = vor.u32 %v3713_v45, %v3344_v39  ;;  %v3707_v1 = vld [vmem:[#allocation5 + $0x1a4] sm:$0xf0]  ;;  %v3708_v39 = vld [vmem:[#allocation5 + $0x1b4] sm:$0xf]  ;;  %v3330_v45 = vld [vmem:[#allocation5 + $0x1b8] sm:$0xf0] }
  0xfa   :  { %v3321_v12 = vor.u32 %v3707_v1, %v3320_v0 }
  0xfb   :  { %2024 = vmatpush.bf16.msrb.mxu0 %v3157_v32  ;;  %2037 = vmatpush.bf16.msrb.mxu1 %v3221_v35  ;;  %v1413_v25 = vadd.f32 %v1412_v56, %v1400_v55  ;;  %v3298_v32 = vld [vmem:[#allocation5 + $0x178] sm:$0xf0]  ;;  %v3690_v55 = vld [vmem:[#allocation5 + $0x124] sm:$0xf] }
  0xfc   :  { %v3301_v35 = vor.u32 %v3700_v15, %v3298_v32  ;;  %2011 = vmatpush.bf16.msra.mxu3 %v3345_v46  ;;  %v3261_v59 = vor.u32 %v3690_v55, %v3258_v57  ;;  %v3362_v15 = vld [vmem:[#allocation5 + $0x1f8] sm:$0xf0]  ;;  %v3333_v46 = vor.u32 %v3708_v39, %v3330_v45  ;;  %v3702_v55 = vld [vmem:[#allocation5 + $0x184] sm:$0xf] }
  0xfd   :  { %v1573_v3 = vmax.f32 %v1413_v25, 0.0  ;;  %v3709_v25 = vld [vmem:[#allocation5 + $0x1b4] sm:$0xf0]  ;;  %v3726_v39 = vld [vmem:[#allocation7 + $0x40] sm:$0xff] }
  0xfe   :  { %2048 = vmatpush.bf16.msrb.mxu2 %v3301_v35  ;;  %v3714_v35 = vld [vmem:[#allocation5 + $0x1e4] sm:$0xf] }
  0xff   :  { %2025 = vmatpush.bf16.msrb.mxu0 %v3149_v31  ;;  %2038 = vmatpush.bf16.msrb.mxu1 %v3213_v33  ;;  %v1577_v11 = vpack.c.bf16 %v1573_v3, %v1573_v3  ;;  %v1414_v18 = vpop.f32.mrf.mxu3  ;;  %v3696_v31 = vld [vmem:[#allocation5 + $0x154] sm:$0xf]  ;;  %v3357_v28 = vor.u32 %v3714_v35, %v3354_v26  ;;  %v3725_v35 = vld [vmem:[#allocation7 + $0x38] sm:$0xff] }
 0x100   :  { %v1401_v8 = vpop.f32.mrf.mxu2  ;;  %v3285_v38 = vor.u32 %v3696_v31, %v3282_v34  ;;  %2012 = vmatpush.bf16.msra.mxu3 %v3337_v9  ;;  %v3304_v18 = vld [vmem:[#allocation5 + $0x180] sm:$0xf]  ;;  %v3346_v31 = vld [vmem:[#allocation5 + $0x1d8] sm:$0xf0]  ;;  %v295_v9 = vperm.slane %v3971_v54, 3  ;;  %v3724_v26 = vld [vmem:[#allocation7 + $0x30] sm:$0xff] }
 0x101   :  { %1991 = vmatmul.bf16.vlgmr.msra.gmra.mxu1 %v1577_v11  ;;  %v3305_v20 = vor.u32 %v3703_v19, %v3304_v18 }
 0x102   :  { %2049 = vmatpush.bf16.msrb.mxu2 %v3293_v21 }
 0x103   :  { %2026 = vmatpush.bf16.msrb.mxu0 %v3141_v37  ;;  %2039 = vmatpush.bf16.msrb.mxu1 %v3205_v49 }
 0x106   :  { %2050 = vmatpush.bf16.msrb.mxu2 %v3285_v38 }
 0x107   :  { %2027 = vmatpush.bf16.msrb.mxu0 %v3133_v58  ;;  %2040 = vmatpush.bf16.msrb.mxu1 %v3197_v61  ;;  %v3328_v58 = vld [vmem:[#allocation5 + $0x1b0] sm:$0xf]  ;;  %v3688_v61 = vld [vmem:[#allocation5 + $0x114] sm:$0xf] }
 0x108   :  { %v3329_v63 = vor.u32 %v3709_v25, %v3328_v58  ;;  %v3253_v2 = vor.u32 %v3688_v61, %v3250_v62 }
 0x10a   :  { %2013 = vmatpush.bf16.msra.mxu3 %v3329_v63 }
 0x10b   :  { %2028 = vmatpush.bf16.msrb.mxu0 %v3125_v7  ;;  %2041 = vmatpush.bf16.msrb.mxu1 %v3189_v14  ;;  %v3242_v7 = vld [vmem:[#allocation5 + $0x108] sm:$0xf0]  ;;  %v3705_v14 = vld [vmem:[#allocation5 + $0x194] sm:$0xf0] }
 0x10c   :  { %v3245_v16 = vor.u32 %v3686_v6, %v3242_v7  ;;  %v3313_v8 = vor.u32 %v3705_v14, %v3312_v13  ;;  %v1644_v14 = vld [vmem:[%s4038_s4] sm:$0x3] }
 0x10e   :  { %2014 = vmatpush.bf16.msra.mxu3 %v3321_v12 }
 0x10f   :  { %2029 = vmatpush.bf16.msrb.mxu0 %v3117_v22  ;;  %2042 = vmatpush.bf16.msrb.mxu1 %v3181_v23  ;;  %v1425_v36 = vpop.f32.mrf.mxu0  ;;  %v1438_v33 = vpop.f32.mrf.mxu1  ;;  %v3716_v22 = vld [vmem:[#allocation5 + $0x1f4] sm:$0xf] }
 0x110   :  { %v1426_v3 = vadd.f32 %v1425_v36, %v294_v60  ;;  %v3365_v23 = vor.u32 %v3716_v22, %v3362_v15  ;;  %v3349_v36 = vor.u32 %v3712_v30, %v3346_v31  ;;  %v3732_v30 = vld [vmem:[#allocation7 + $0x70] sm:$0xff] }
 0x111   :  { %v3720_v31 = vld [vmem:[#allocation7 + $0x10] sm:$0xff] }
 0x112   :  { %2030 = vmatmul.bf16.vlgmr.msrb.gmra.mxu0 %v3985_v10  ;;  %2043 = vmatmul.bf16.vlgmr.msrb.gmra.mxu1 %v1577_v11  ;;  %v3277_v10 = vor.u32 %v3694_v43, %v3274_v44  ;;  %v1439_v17 = vadd.f32 %v1438_v33, %v1426_v3  ;;  %v3338_v43 = vld [vmem:[#allocation5 + $0x1c8] sm:$0xf0] }
 0x113   :  { %2015 = vmatpush.bf16.msra.mxu3 %v3313_v8  ;;  %2210 = vmatpush.bf16.msra.mxu0 %v3725_v35 }
 0x114   :  { %2051 = vmatpush.bf16.msrb.mxu2 %v3277_v10  ;;  %v3341_v10 = vor.u32 %v3710_v42, %v3338_v43  ;;  %v3729_v42 = vld [vmem:[#allocation7 + $0x58] sm:$0xff]  ;;  %v3728_v43 = vld [vmem:[#allocation7 + $0x50] sm:$0xff] }
 0x117   :  { %v1427_v49 = vpop.f32.mrf.mxu0  ;;  %v1464_v50 = vpop.f32.mrf.mxu3  ;;  %2016 = vmatpush.bf16.msra.mxu3 %v3305_v20  ;;  %v1647_v20 = vperm.slane %v1644_v14, 1  ;;  %2211 = vmatpush.bf16.msra.mxu0 %v3724_v26 }
 0x118   :  { %v1451_v37 = vpop.f32.mrf.mxu2  ;;  %v1440_v56 = vpop.f32.mrf.mxu1  ;;  %2052 = vmatpush.bf16.msrb.mxu2 %v3269_v51  ;;  %v3704_v51 = vld [vmem:[#allocation5 + $0x194] sm:$0xf] }
 0x119   :  { %v1452_v5 = vadd.f32 %v1451_v37, %v1439_v17  ;;  %v3706_v37 = vld [vmem:[#allocation5 + $0x1a4] sm:$0xf]  ;;  %v3317_v53 = vor.u32 %v3704_v51, %v3314_v52  ;;  %v3306_v56 = vld [vmem:[#allocation5 + $0x188] sm:$0xf0] }
 0x11a   :  { %v3325_v49 = vor.u32 %v3706_v37, %v3322_v47  ;;  %v3309_v57 = vor.u32 %v3702_v55, %v3306_v56  ;;  %v3740_v37 = vld [vmem:[%s4041_s7 + $0x30] sm:$0xff] }
 0x11b   :  { %v1465_v32 = vadd.f32 %v1464_v50, %v1452_v5  ;;  %2061 = vmatpush.bf16.msrb.mxu3 %v3365_v23 }
 0x11c   :  { %2053 = vmatpush.bf16.msrb.mxu2 %v3261_v59 }
 0x11f   :  { %v1466_v11 = vpop.f32.mrf.mxu3  ;;  %2062 = vmatpush.bf16.msrb.mxu3 %v3357_v28  ;;  %v3721_v28 = vld [vmem:[#allocation7 + $0x18] sm:$0xff] }
 0x120   :  { %v1453_v4 = vpop.f32.mrf.mxu2  ;;  %2054 = vmatpush.bf16.msrb.mxu2 %v3253_v2 }
 0x123   :  { %2063 = vmatpush.bf16.msrb.mxu3 %v3349_v36  ;;  %v3719_v36 = vld [vmem:[#allocation7 + $0x8] sm:$0xff] }
 0x124   :  { %2055 = vmatpush.bf16.msrb.mxu2 %v3245_v16  ;;  %v1646_v16 = vperm.slane %v1644_v14, 0 }
 0x127   :  { %2064 = vmatpush.bf16.msrb.mxu3 %v3341_v10  ;;  %v3727_v10 = vld [vmem:[#allocation7 + $0x48] sm:$0xff] }
 0x12b   :  { %2065 = vmatpush.bf16.msrb.mxu3 %v3333_v46  ;;  %v3741_v46 = vld [vmem:[%s4041_s7 + $0x38] sm:$0xff] }
 0x12f   :  { %v1477_v24 = vpop.f32.mrf.mxu0  ;;  %v1490_v21 = vpop.f32.mrf.mxu1  ;;  %2066 = vmatpush.bf16.msrb.mxu3 %v3325_v49 }
 0x130   :  { %v1478_v27 = vadd.f32 %v1477_v24, %v1465_v32 }
 0x132   :  { %v1491_v29 = vadd.f32 %v1490_v21, %v1478_v27  ;;  %v3723_v27 = vld [vmem:[#allocation7 + $0x28] sm:$0xff]  ;;  %v3722_v21 = vld [vmem:[#allocation7 + $0x20] sm:$0xff] }
 0x133   :  { %2067 = vmatpush.bf16.msrb.mxu3 %v3317_v53  ;;  %2212 = vmatpush.bf16.msra.mxu0 %v3723_v27 }
 0x134   :  { %v1574_v34 = vmax.f32 %v1491_v29, 0.0  ;;  %v3733_v29 = vld [vmem:[#allocation7 + $0x78] sm:$0xff] }
 0x135   :  { %2223 = vmatpush.bf16.msra.mxu1 %v3733_v29 }
 0x136   :  { %v1578_v38 = vpack.c.bf16 %v1574_v34, %v1574_v34 }
 0x137   :  { %v1516_v40 = vpop.f32.mrf.mxu3  ;;  %v1479_v41 = vpop.f32.mrf.mxu0  ;;  %2068 = vmatpush.bf16.msrb.mxu3 %v3309_v57  ;;  %2213 = vmatpush.bf16.msra.mxu0 %v3722_v21 }
 0x138   :  { %v1503_v33 = vpop.f32.mrf.mxu2  ;;  %2004 = vmatmul.bf16.vlgmr.msra.gmra.mxu2 %v1578_v38  ;;  %v1492_v44 = vpop.f32.mrf.mxu1 }
 0x139   :  { %v1504_v58 = vadd.f32 %v1503_v33, %v295_v9  ;;  %2224 = vmatpush.bf16.msra.mxu1 %v3732_v30  ;;  %v3718_v33 = vld [vmem:[#allocation7] sm:$0xff]  ;;  %2306 = vmatpush.bf16.msra.mxu2 %v3741_v46 }
 0x13b   :  { %v1517_v25 = vadd.f32 %v1516_v40, %v1504_v58  ;;  %2214 = vmatpush.bf16.msra.mxu0 %v3721_v28  ;;  %v3730_v40 = vld [vmem:[#allocation7 + $0x60] sm:$0xff] }
 0x13d   :  { %2307 = vmatpush.bf16.msra.mxu2 %v3740_v37 }
 0x13f   :  { %v1518_v50 = vpop.f32.mrf.mxu3  ;;  %2215 = vmatpush.bf16.msra.mxu0 %v3720_v31 }
 0x140   :  { %v1505_v48 = vpop.f32.mrf.mxu2 }
 0x143   :  { %2216 = vmatpush.bf16.msra.mxu0 %v3719_v36 }
 0x147   :  { %2217 = vmatpush.bf16.msra.mxu0 %v3718_v33 }
 0x148   :  { %2056 = vmatmul.bf16.vlgmr.msrb.gmra.mxu2 %v1578_v38  ;;  %v3731_v38 = vld [vmem:[#allocation7 + $0x68] sm:$0xff] }
 0x149   :  { %2225 = vmatpush.bf16.msra.mxu1 %v3731_v38 }
 0x14d   :  { %2226 = vmatpush.bf16.msra.mxu1 %v3730_v40 }
 0x14f   :  { %v1529_v59 = vpop.f32.mrf.mxu0  ;;  %v1542_v60 = vpop.f32.mrf.mxu1 }
 0x150   :  { %v1530_v61 = vadd.f32 %v1529_v59, %v1517_v25  ;;  %v3739_v25 = vld [vmem:[%s4041_s7 + $0x28] sm:$0xff]  ;;  %v3738_v59 = vld [vmem:[%s4041_s7 + $0x20] sm:$0xff] }
 0x151   :  { %2227 = vmatpush.bf16.msra.mxu1 %v3729_v42  ;;  %2308 = vmatpush.bf16.msra.mxu2 %v3739_v25 }
 0x152   :  { %v1543_v62 = vadd.f32 %v1542_v60, %v1530_v61  ;;  %v3737_v60 = vld [vmem:[%s4041_s7 + $0x18] sm:$0xff]  ;;  %v3736_v61 = vld [vmem:[%s4041_s7 + $0x10] sm:$0xff] }
 0x155   :  { %2228 = vmatpush.bf16.msra.mxu1 %v3728_v43  ;;  %2309 = vmatpush.bf16.msra.mxu2 %v3738_v59 }
 0x157   :  { %v1555_v63 = vpop.f32.mrf.mxu2  ;;  %v1568_v1 = vpop.f32.mrf.mxu3 }
 0x158   :  { %v1556_v0 = vadd.f32 %v1555_v63, %v1543_v62  ;;  %v1531_v2 = vpop.f32.mrf.mxu0  ;;  %v1544_v3 = vpop.f32.mrf.mxu1  ;;  %v3735_v62 = vld [vmem:[%s4041_s7 + $0x8] sm:$0xff]  ;;  %v3734_v63 = vld [vmem:[%s4041_s7] sm:$0xff] }
 0x159   :  { %2229 = vmatpush.bf16.msra.mxu1 %v3727_v10  ;;  %2310 = vmatpush.bf16.msra.mxu2 %v3737_v60  ;;  %v3751_v2 = vld [vmem:[%s4040_s6] ss:$0 sm:$0xff] }
 0x15a   :  { %v1569_v4 = vadd.f32 %v1568_v1, %v1556_v0 }
 0x15c   :  { %v1575_v6 = vmax.f32 %v1569_v4, 0.0 }
 0x15d   :  { %2230 = vmatpush.bf16.msra.mxu1 %v3726_v39  ;;  %2311 = vmatpush.bf16.msra.mxu2 %v3736_v61 }
 0x15e   :  { %v1579_v7 = vpack.c.bf16 %v1575_v6, %v1575_v6 }
 0x15f   :  { %v1557_v11 = vpop.f32.mrf.mxu2  ;;  %v1570_v54 = vpop.f32.mrf.mxu3 }
 0x160   :  { %2017 = vmatmul.bf16.vlgmr.msra.gmra.mxu3 %v1579_v7 }
 0x161   :  { %2312 = vmatpush.bf16.msra.mxu2 %v3735_v62 }
 0x165   :  { %2313 = vmatpush.bf16.msra.mxu2 %v3734_v63 }
 0x16f   :  { %v1979_v12 = vpop.f32.mrf.mxu0 }
 0x170   :  { %2069 = vmatmul.bf16.vlgmr.msrb.gmra.mxu3 %v1579_v7  ;;  %v1980_v17 = vadd.f32 %v1979_v12, %v1646_v16  ;;  %v3752_v12 = vld [vmem:[%s4042_s8] ss:$0 sm:$0xff] }
 0x171   :  { %v3753_v16 = vld [vmem:[%s4043_s9] ss:$0 sm:$0xff] }
 0x177   :  { %v1981_v13 = vpop.f32.mrf.mxu0 }
 0x17e   :  { %v1992_v8 = vpop.f32.mrf.mxu1 }
 0x17f   :  { %v1993_v5 = vadd.f32 %v1992_v8, %v1980_v17 }
 0x186   :  { %v1994_v19 = vpop.f32.mrf.mxu1 }
 0x187   :  { %v2330_v19 = vstv %s4044_s10 }
 0x18f   :  { %v2031_v18 = vpop.f32.mrf.mxu0  ;;  %v2044_v32 = vpop.f32.mrf.mxu1 }
 0x190   :  { %v2032_v22 = vadd.f32 %v2031_v18, %v1647_v20 }
 0x192   :  { %v2045_v23 = vadd.f32 %v2044_v32, %v2032_v22 }
 0x197   :  { %v2033_v15 = vpop.f32.mrf.mxu0  ;;  %v2046_v24 = vpop.f32.mrf.mxu1 }
 0x1bb   :  { %v2005_v34 = vpop.f32.mrf.mxu2 }
 0x1bc   :  { %v2006_v47 = vadd.f32 %v2005_v34, %v1993_v5 }
 0x1c3   :  { %v2007_v41 = vpop.f32.mrf.mxu2 }
 0x1cb   :  { %v2057_v44 = vpop.f32.mrf.mxu2 }
 0x1cc   :  { %v2058_v53 = vadd.f32 %v2057_v44, %v2045_v23 }
 0x1d3   :  { %v2059_v45 = vpop.f32.mrf.mxu2 }
 0x1e3   :  { %v2018_v48 = vpop.f32.mrf.mxu3 }
 0x1e4   :  { %v2019_v49 = vadd.f32 %v2018_v48, %v2006_v47 }
 0x1e6   :  { %v2074_v50 = vmax.f32 %v2019_v49, 0.0 }
 0x1e8   :  { %v2076_v51 = vpack.c.bf16 %v2074_v50, %v2074_v50 }
 0x1ea   :  { %2218 = vmatmul.bf16.vlgmr.msra.gmra.mxu0 %v2076_v51 }
 0x1eb   :  { %v2020_v52 = vpop.f32.mrf.mxu3 }
 0x1f3   :  { %v2070_v55 = vpop.f32.mrf.mxu3 }
 0x1f4   :  { %v2071_v56 = vadd.f32 %v2070_v55, %v2058_v53 }
 0x1f6   :  { %v2075_v9 = vmax.f32 %v2071_v56, 0.0 }
 0x1f8   :  { %v2077_v57 = vpack.c.bf16 %v2075_v9, %v2075_v9 }
 0x1fa   :  { %2231 = vmatmul.bf16.vlgmr.msra.gmra.mxu1 %v2077_v57 }
 0x1fb   :  { %v2072_v58 = vpop.f32.mrf.mxu3 }
 0x267   :  { %v2219_v0 = vpop.f32.mrf.mxu0 }
 0x268   :  { %v2220_v3 = vadd.f32 %v3751_v2, %v2219_v0 }
 0x26f   :  { %v2221_v1 = vpop.f32.mrf.mxu0 }
 0x277   :  { %v2232_v4 = vpop.f32.mrf.mxu1 }
 0x278   :  { %v2233_v6 = vadd.f32 %v2232_v4, %v2220_v3 }
 0x27a   :  { %v2236_v7 = vmax.f32 %v2233_v6, 0.0 }
 0x27c   :  { %v2237_v11 = vpack.c.bf16 %v2236_v7, %v2236_v7 }
 0x27e   :  { %2314 = vmatmul.bf16.vlgmr.msra.gmra.mxu2 %v2237_v11 }
 0x27f   :  { %v2234_v54 = vpop.f32.mrf.mxu1 }
 0x301   :  { %v2315_v13 = vpop.f32.mrf.mxu2 }
 0x302   :  { %v2316_v14 = vadd.f32 %v3752_v12, %v2315_v13 }
 0x304   :  { %v2319_v17 = vmax.f32 %v2316_v14, 0.0 }
 0x306   :  { %v2324_v8 = vmul.f32 %v3753_v16, %v2319_v17 }
 0x308   :  { %v2326_v5 = vsel %vm2325_vm0, %v2324_v8, 0.0 }
 0x309   :  { %v2317_v18 = vpop.f32.mrf.mxu2  ;;  %2327 = vadd.xlane.f32.xlu0 %v2326_v5 }
 0x37c   :  { %v2328_v20 = vpop.xlane.xlu0 %2327 }
 0x37d   :  { %v2331_v22 = vadd.f32 %v2330_v19, %v2328_v20 }
 0x37f   :  { %3754 = vtanh.f32 %v2331_v22 }
 0x385   :  { %v3755_v15 = vpop.eup %3754 }
 0x386   :  { %v2333_v32 = vmul.f32 1000.0, %v3755_v15 }
 0x388   :  { %2335 = vst.msk [vmem:[%s4045_s11] sm:$0xff] %vm2334_vm1, %v2333_v32 }
 0x389   :  { %2340 = vsyncpa [#allocation4], 1 }
 0x38a   :  { %2341 = vsyncpa [#allocation6], 1 }

</bundles_post_ra>
